<compile_context>
chip_gen: v7x
topology: tpu7x:2x2x1
jax: 0.10.0
libtpu: 0.0.40
codegen_flags: <defaults>
</compile_context>

<pallas_src>
import math
import functools

import jax
import jax.numpy as jnp
from jax.experimental import pallas as pl
from jax.experimental.pallas import tpu as pltpu

LN_EPS = 1e-5


def _erf(x):
    # Abramowitz & Stegun 7.1.26 rational approximation (|err| < 1.5e-7, fine for f32).
    a1, a2, a3, a4, a5 = (0.254829592, -0.284496736, 1.421413741,
                          -1.453152027, 1.061405429)
    p = 0.3275911
    ax = jnp.abs(x)
    t = 1.0 / (1.0 + p * ax)
    poly = ((((a5 * t + a4) * t + a3) * t + a2) * t + a1) * t
    e = 1.0 - poly * jnp.exp(-ax * ax)
    return jnp.where(x >= 0.0, e, -e)


def _gelu_exact(x):
    return 0.5 * x * (1.0 + _erf(x * (1.0 / math.sqrt(2.0))))


def _layernorm(x, gamma, beta):
    mu = jnp.mean(x, axis=-1, keepdims=True)
    xc = x - mu
    var = jnp.mean(xc * xc, axis=-1, keepdims=True)
    inv = jax.lax.rsqrt(var + LN_EPS)
    return xc * inv * gamma + beta


def _decoder_layer_kernel(x_ref,
                          wqkv_ref, bqkv_ref, wo_h_ref, bo_ref,
                          g1_ref, be1_ref,
                          w1_ref, b1_ref, w2_ref, b2_ref,
                          g2_ref, be2_ref,
                          o_ref,
                          *, n_heads):
    BT, S, D = x_ref.shape
    hd = D // n_heads

    x = x_ref[...].astype(jnp.float32)            # (BT, S, D)
    x2 = x.reshape(BT * S, D)                     # flatten batch tile -> big-GEMM M dim

    # ---- fused QKV projection (one GEMM; 1/sqrt(hd) pre-folded into Q cols) ----
    qkv = jnp.dot(x2, wqkv_ref[...],
                  preferred_element_type=jnp.float32) + bqkv_ref[...]
    q = qkv[:, 0 * D:1 * D].reshape(BT, S, D)
    k = qkv[:, 1 * D:2 * D].reshape(BT, S, D)
    v = qkv[:, 2 * D:3 * D].reshape(BT, S, D)

    # ---- self attention (no mask), batched over the batch tile per head ----
    # Out-projection is accumulated per head: attn_out += (p @ v_h) @ wo[h]
    attn_out = jnp.zeros((BT * S, D), jnp.float32)
    for h in range(n_heads):                      # static, small head count
        lo, hi = h * hd, (h + 1) * hd
        qh = q[:, :, lo:hi]                       # (BT, S, hd)
        kh = k[:, :, lo:hi]
        vh = v[:, :, lo:hi]
        s = jnp.einsum('bqd,bkd->bqk', qh, kh,
                       preferred_element_type=jnp.float32)       # (BT, S, S)
        s = s - jnp.max(s, axis=-1, keepdims=True)
        p = jnp.exp(s)
        p = p * (1.0 / jnp.sum(p, axis=-1, keepdims=True))
        ctx = jnp.einsum('bqk,bkd->bqd', p, vh,
                         preferred_element_type=jnp.float32)     # (BT, S, hd)
        attn_out = attn_out + jnp.dot(ctx.reshape(BT * S, hd), wo_h_ref[h],
                                      preferred_element_type=jnp.float32)
    attn_out = attn_out + bo_ref[...]

    # ---- residual + LayerNorm ----
    x1 = _layernorm(x2 + attn_out, g1_ref[...], be1_ref[...])

    # ---- FFN: Linear -> GELU(exact) -> Linear ----
    h1 = jnp.dot(x1, w1_ref[...], preferred_element_type=jnp.float32) + b1_ref[...]
    h1 = _gelu_exact(h1)
    ffn = jnp.dot(h1, w2_ref[...], preferred_element_type=jnp.float32) + b2_ref[...]

    # ---- residual + LayerNorm ----
    out = _layernorm(x1 + ffn, g2_ref[...], be2_ref[...])
    o_ref[...] = out.reshape(BT, S, D).astype(o_ref.dtype)


def _pick_block_b(B, S, rows_target=256):
    """Smallest divisor of B giving >= rows_target flattened rows, else all of B."""
    for d in range(1, B + 1):
        if B % d == 0 and d * S >= rows_target:
            return d
    return B


def decoder_layer(x, params, n_heads, *, block_b=None):
    B, S, D = x.shape
    assert D % n_heads == 0, "d_model must be divisible by n_heads"
    hd = D // n_heads

    if block_b is None:
        block_b = _pick_block_b(B, S)
    assert B % block_b == 0

    # Fold the 1/sqrt(hd) attention scale into the Q columns of the fused QKV
    # projection (weight and bias) — free, removes a per-head (S,S) multiply.
    scale = 1.0 / math.sqrt(hd)
    qs = jnp.concatenate(
        [jnp.full((D,), scale, jnp.float32), jnp.ones((2 * D,), jnp.float32)])
    wqkv = params["wqkv"] * qs[None, :]
    bqkv = params["bqkv"] * qs[None, :]
    # Out-projection weight split by head: (H, hd, D), already (in, out) oriented.
    wo_heads = params["wo"].reshape(n_heads, hd, D)

    def full(arr):
        shp = arr.shape
        return pl.BlockSpec(shp, lambda b: (0,) * len(shp))

    in_specs = [
        pl.BlockSpec((block_b, S, D), lambda b: (b, 0, 0)),   # x (batch tile)
        full(wqkv), full(bqkv),
        full(wo_heads), full(params["bo"]),
        full(params["g1"]), full(params["be1"]),
        full(params["w1"]), full(params["b1"]),
        full(params["w2"]), full(params["b2"]),
        full(params["g2"]), full(params["be2"]),
    ]
    out_spec = pl.BlockSpec((block_b, S, D), lambda b: (b, 0, 0))

    kernel = functools.partial(_decoder_layer_kernel, n_heads=n_heads)
    return pl.pallas_call(
        kernel,
        out_shape=jax.ShapeDtypeStruct((B, S, D), x.dtype),
        grid_spec=pltpu.PrefetchScalarGridSpec(
            num_scalar_prefetch=0,
            grid=(B // block_b,),
            in_specs=in_specs,
            out_specs=out_spec,
        ),
        compiler_params=pltpu.CompilerParams(
            dimension_semantics=("parallel",),
            vmem_limit_bytes=64 * 1024 * 1024,
        ),
    )(x, wqkv, bqkv, wo_heads, params["bo"],
      params["g1"], params["be1"],
      params["w1"], params["b1"], params["w2"], params["b2"],
      params["g2"], params["be2"])


# ---------------- parameter init (deterministic, mirrors module shapes) ----------------
def init_params(key, d_model, d_ff):
    def xavier(key, fan_in, fan_out, shape):
        limit = math.sqrt(6.0 / (fan_in + fan_out))
        return jax.random.uniform(key, shape, jnp.float32, -limit, limit)

    ks = jax.random.split(key, 6)
    # MHA: in_proj_weight (3D, D) xavier, biases zero; out_proj (D, D).
    # Stored transposed: (in, out).
    wqkv = xavier(ks[0], d_model, 3 * d_model, (d_model, 3 * d_model))
    bqkv = jnp.zeros((1, 3 * d_model), jnp.float32)
    wo = xavier(ks[1], d_model, d_model, (d_model, d_model))
    bo = jnp.zeros((1, d_model), jnp.float32)
    # FFN linears: xavier_uniform weights (as in the module), small uniform biases.
    w1 = xavier(ks[2], d_model, d_ff, (d_model, d_ff))
    b1 = jax.random.uniform(ks[3], (1, d_ff), jnp.float32,
                            -1.0 / math.sqrt(d_model), 1.0 / math.sqrt(d_model))
    w2 = xavier(ks[4], d_ff, d_model, (d_ff, d_model))
    b2 = jax.random.uniform(ks[5], (1, d_model), jnp.float32,
                            -1.0 / math.sqrt(d_ff), 1.0 / math.sqrt(d_ff))
    return dict(
        wqkv=wqkv, bqkv=bqkv, wo=wo, bo=bo,
        g1=jnp.ones((1, d_model), jnp.float32), be1=jnp.zeros((1, d_model), jnp.float32),
        w1=w1, b1=b1, w2=w2, b2=b2,
        g2=jnp.ones((1, d_model), jnp.float32), be2=jnp.zeros((1, d_model), jnp.float32),
    )


# ---------------- pure-JAX reference (same math, exact erf) ----------------
def reference(x, p, n_heads):
    B, S, D = x.shape
    hd = D // n_heads

    def ln(t, g, b):
        mu = t.mean(-1, keepdims=True)
        var = ((t - mu) ** 2).mean(-1, keepdims=True)
        return (t - mu) / jnp.sqrt(var + LN_EPS) * g + b

    qkv = x @ p["wqkv"] + p["bqkv"]
    q, k, v = jnp.split(qkv, 3, axis=-1)

    def heads(t):
        return t.reshape(B, S, n_heads, hd).transpose(0, 2, 1, 3)

    q, k, v = heads(q), heads(k), heads(v)
    s = jnp.einsum("bhqd,bhkd->bhqk", q, k) / math.sqrt(hd)
    a = jax.nn.softmax(s, axis=-1)
    attn = jnp.einsum("bhqk,bhkd->bhqd", a, v).transpose(0, 2, 1, 3).reshape(B, S, D)
    attn_out = attn @ p["wo"] + p["bo"]
    x1 = ln(x + attn_out, p["g1"], p["be1"])
    h = x1 @ p["w1"] + p["b1"]
    h = 0.5 * h * (1.0 + jax.scipy.special.erf(h / math.sqrt(2.0)))
    ffn = h @ p["w2"] + p["b2"]
    return ln(x1 + ffn, p["g2"], p["be2"])


if __name__ == "__main__":
    B, S, D, H, DFF = 2, 8, 32, 4, 64
    key = jax.random.PRNGKey(0)
    kx, kp = jax.random.split(key)
    x = jax.random.normal(kx, (B, S, D), jnp.float32)
    params = init_params(kp, D, DFF)

    out = decoder_layer(x, params, n_heads=H)
    out = jax.block_until_ready(out)

    ref = reference(x, params, H)
    err = float(jnp.max(jnp.abs(out - ref)))
    assert err < 5e-5, f"mismatch vs reference: {err}"
    print("KERNEL_OK")
</pallas_src>

<mosaic_0001>
module attributes {stable_mosaic.version = 11 : i64} {
  func.func @_decoder_layer_kernel(%arg0: i32, %arg1: memref<2x8x32xf32, #tpu.memory_space<vmem>>, %arg2: memref<32x96xf32, #tpu.memory_space<vmem>>, %arg3: memref<1x96xf32, #tpu.memory_space<vmem>>, %arg4: memref<4x8x32xf32, #tpu.memory_space<vmem>>, %arg5: memref<1x32xf32, #tpu.memory_space<vmem>>, %arg6: memref<1x32xf32, #tpu.memory_space<vmem>>, %arg7: memref<1x32xf32, #tpu.memory_space<vmem>>, %arg8: memref<32x64xf32, #tpu.memory_space<vmem>>, %arg9: memref<1x64xf32, #tpu.memory_space<vmem>>, %arg10: memref<64x32xf32, #tpu.memory_space<vmem>>, %arg11: memref<1x32xf32, #tpu.memory_space<vmem>>, %arg12: memref<1x32xf32, #tpu.memory_space<vmem>>, %arg13: memref<1x32xf32, #tpu.memory_space<vmem>>, %arg14: memref<2x8x32xf32, #tpu.memory_space<vmem>>) attributes {dimension_semantics = [#tpu.dimension_semantics<parallel>], iteration_bounds = array<i64: 1>, scalar_prefetch = 0 : i64, scratch_operands = 0 : i64, tpu.core_type = #tpu.core_type<tc>, window_params = [{transform_indices = @transform_0, window_bounds = array<i64: 2, 8, 32>}, {pipeline_mode = #tpu.pipeline_mode<synchronous>, transform_indices = @transform_1, window_bounds = array<i64: 32, 96>}, {pipeline_mode = #tpu.pipeline_mode<synchronous>, transform_indices = @transform_2, window_bounds = array<i64: 1, 96>}, {pipeline_mode = #tpu.pipeline_mode<synchronous>, transform_indices = @transform_3, window_bounds = array<i64: 4, 8, 32>}, {pipeline_mode = #tpu.pipeline_mode<synchronous>, transform_indices = @transform_4, window_bounds = array<i64: 1, 32>}, {pipeline_mode = #tpu.pipeline_mode<synchronous>, transform_indices = @transform_5, window_bounds = array<i64: 1, 32>}, {pipeline_mode = #tpu.pipeline_mode<synchronous>, transform_indices = @transform_6, window_bounds = array<i64: 1, 32>}, {pipeline_mode = #tpu.pipeline_mode<synchronous>, transform_indices = @transform_7, window_bounds = array<i64: 32, 64>}, {pipeline_mode = #tpu.pipeline_mode<synchronous>, transform_indices = @transform_8, window_bounds = array<i64: 1, 64>}, {pipeline_mode = #tpu.pipeline_mode<synchronous>, transform_indices = @transform_9, window_bounds = array<i64: 64, 32>}, {pipeline_mode = #tpu.pipeline_mode<synchronous>, transform_indices = @transform_10, window_bounds = array<i64: 1, 32>}, {pipeline_mode = #tpu.pipeline_mode<synchronous>, transform_indices = @transform_11, window_bounds = array<i64: 1, 32>}, {pipeline_mode = #tpu.pipeline_mode<synchronous>, transform_indices = @transform_12, window_bounds = array<i64: 1, 32>}, {transform_indices = @transform_13, window_bounds = array<i64: 2, 8, 32>}]} {
    %c0 = arith.constant 0 : index
    %c0_0 = arith.constant 0 : index
    %c0_1 = arith.constant 0 : index
    %0 = vector.load %arg1[%c0, %c0_0, %c0_1] : memref<2x8x32xf32, #tpu.memory_space<vmem>>, vector<2x8x32xf32>
    %1 = vector.shape_cast %0 : vector<2x8x32xf32> to vector<16x32xf32>
    %c0_2 = arith.constant 0 : index
    %c0_3 = arith.constant 0 : index
    %2 = vector.load %arg2[%c0_2, %c0_3] : memref<32x96xf32, #tpu.memory_space<vmem>>, vector<32x96xf32>
    %cst = arith.constant dense<0.000000e+00> : vector<16x96xf32>
    %3 = tpu.matmul %1, %2, %cst {dimension_numbers = #tpu.dot_dimension_numbers<[1], [0], [0], [1], [0, 0, 1, 1], [], []>} : vector<16x32xf32>, vector<32x96xf32>, vector<16x96xf32> -> vector<16x96xf32>
    %c0_4 = arith.constant 0 : index
    %c0_5 = arith.constant 0 : index
    %4 = vector.load %arg3[%c0_4, %c0_5] : memref<1x96xf32, #tpu.memory_space<vmem>>, vector<1x96xf32>
    %5 = vector.broadcast %4 : vector<1x96xf32> to vector<16x96xf32>
    %6 = arith.addf %3, %5 : vector<16x96xf32>
    %7 = vector.extract_strided_slice %6 {offsets = [0, 0], sizes = [16, 32], strides = [1, 1]} : vector<16x96xf32> to vector<16x32xf32>
    %8 = vector.shape_cast %7 : vector<16x32xf32> to vector<2x8x32xf32>
    %9 = vector.extract_strided_slice %6 {offsets = [0, 32], sizes = [16, 32], strides = [1, 1]} : vector<16x96xf32> to vector<16x32xf32>
    %10 = vector.shape_cast %9 : vector<16x32xf32> to vector<2x8x32xf32>
    %11 = vector.extract_strided_slice %6 {offsets = [0, 64], sizes = [16, 32], strides = [1, 1]} : vector<16x96xf32> to vector<16x32xf32>
    %12 = vector.shape_cast %11 : vector<16x32xf32> to vector<2x8x32xf32>
    %cst_6 = arith.constant 0.000000e+00 : f32
    %13 = vector.broadcast %cst_6 : f32 to vector<16x32xf32>
    %14 = vector.extract_strided_slice %8 {offsets = [0, 0, 0], sizes = [2, 8, 8], strides = [1, 1, 1]} : vector<2x8x32xf32> to vector<2x8x8xf32>
    %15 = vector.extract_strided_slice %10 {offsets = [0, 0, 0], sizes = [2, 8, 8], strides = [1, 1, 1]} : vector<2x8x32xf32> to vector<2x8x8xf32>
    %16 = vector.extract_strided_slice %12 {offsets = [0, 0, 0], sizes = [2, 8, 8], strides = [1, 1, 1]} : vector<2x8x32xf32> to vector<2x8x8xf32>
    "tpu.trace_start"() <{level = 10 : i32, message = "bqd,bkd->bqk"}> : () -> ()
    %cst_7 = arith.constant dense<0.000000e+00> : vector<2x8x8xf32>
    %17 = tpu.matmul %14, %15, %cst_7 {dimension_numbers = #tpu.dot_dimension_numbers<[2], [2], [1], [1], [0, 0, 0, 1, 1, 1], [0], [0]>} : vector<2x8x8xf32>, vector<2x8x8xf32>, vector<2x8x8xf32> -> vector<2x8x8xf32>
    "tpu.trace_stop"() : () -> ()
    %cst_8 = arith.constant dense<0xFF800000> : vector<2x8xf32>
    %18 = vector.multi_reduction <maximumf>, %17, %cst_8 [2] : vector<2x8x8xf32> to vector<2x8xf32>
    %19 = vector.shape_cast %18 : vector<2x8xf32> to vector<2x8x1xf32>
    %20 = vector.broadcast %19 : vector<2x8x1xf32> to vector<2x8x8xf32>
    %21 = arith.subf %17, %20 : vector<2x8x8xf32>
    %22 = math.exp %21 : vector<2x8x8xf32>
    %cst_9 = arith.constant dense<0.000000e+00> : vector<2x8xf32>
    %23 = vector.multi_reduction <add>, %22, %cst_9 [2] : vector<2x8x8xf32> to vector<2x8xf32>
    %24 = vector.shape_cast %23 : vector<2x8xf32> to vector<2x8x1xf32>
    %cst_10 = arith.constant 1.000000e+00 : f32
    %25 = vector.broadcast %cst_10 : f32 to vector<2x8x1xf32>
    %26 = arith.divf %25, %24 : vector<2x8x1xf32>
    %27 = vector.broadcast %26 : vector<2x8x1xf32> to vector<2x8x8xf32>
    %28 = arith.mulf %22, %27 : vector<2x8x8xf32>
    "tpu.trace_start"() <{level = 10 : i32, message = "bqk,bkd->bqd"}> : () -> ()
    %cst_11 = arith.constant dense<0.000000e+00> : vector<2x8x8xf32>
    %29 = tpu.matmul %28, %16, %cst_11 {dimension_numbers = #tpu.dot_dimension_numbers<[2], [1], [1], [2], [0, 0, 0, 1, 1, 2], [0], [0]>} : vector<2x8x8xf32>, vector<2x8x8xf32>, vector<2x8x8xf32> -> vector<2x8x8xf32>
    "tpu.trace_stop"() : () -> ()
    %30 = vector.shape_cast %29 : vector<2x8x8xf32> to vector<16x8xf32>
    %c0_12 = arith.constant 0 : index
    %c0_13 = arith.constant 0 : index
    %c0_14 = arith.constant 0 : index
    %31 = vector.load %arg4[%c0_12, %c0_13, %c0_14] : memref<4x8x32xf32, #tpu.memory_space<vmem>>, vector<1x8x32xf32>
    %32 = vector.shape_cast %31 : vector<1x8x32xf32> to vector<8x32xf32>
    %cst_15 = arith.constant dense<0.000000e+00> : vector<16x32xf32>
    %33 = tpu.matmul %30, %32, %cst_15 {dimension_numbers = #tpu.dot_dimension_numbers<[1], [0], [0], [1], [0, 0, 1, 1], [], []>} : vector<16x8xf32>, vector<8x32xf32>, vector<16x32xf32> -> vector<16x32xf32>
    %34 = arith.addf %13, %33 : vector<16x32xf32>
    %35 = vector.extract_strided_slice %8 {offsets = [0, 0, 8], sizes = [2, 8, 8], strides = [1, 1, 1]} : vector<2x8x32xf32> to vector<2x8x8xf32>
    %36 = vector.extract_strided_slice %10 {offsets = [0, 0, 8], sizes = [2, 8, 8], strides = [1, 1, 1]} : vector<2x8x32xf32> to vector<2x8x8xf32>
    %37 = vector.extract_strided_slice %12 {offsets = [0, 0, 8], sizes = [2, 8, 8], strides = [1, 1, 1]} : vector<2x8x32xf32> to vector<2x8x8xf32>
    "tpu.trace_start"() <{level = 10 : i32, message = "bqd,bkd->bqk"}> : () -> ()
    %cst_16 = arith.constant dense<0.000000e+00> : vector<2x8x8xf32>
    %38 = tpu.matmul %35, %36, %cst_16 {dimension_numbers = #tpu.dot_dimension_numbers<[2], [2], [1], [1], [0, 0, 0, 1, 1, 1], [0], [0]>} : vector<2x8x8xf32>, vector<2x8x8xf32>, vector<2x8x8xf32> -> vector<2x8x8xf32>
    "tpu.trace_stop"() : () -> ()
    %cst_17 = arith.constant dense<0xFF800000> : vector<2x8xf32>
    %39 = vector.multi_reduction <maximumf>, %38, %cst_17 [2] : vector<2x8x8xf32> to vector<2x8xf32>
    %40 = vector.shape_cast %39 : vector<2x8xf32> to vector<2x8x1xf32>
    %41 = vector.broadcast %40 : vector<2x8x1xf32> to vector<2x8x8xf32>
    %42 = arith.subf %38, %41 : vector<2x8x8xf32>
    %43 = math.exp %42 : vector<2x8x8xf32>
    %cst_18 = arith.constant dense<0.000000e+00> : vector<2x8xf32>
    %44 = vector.multi_reduction <add>, %43, %cst_18 [2] : vector<2x8x8xf32> to vector<2x8xf32>
    %45 = vector.shape_cast %44 : vector<2x8xf32> to vector<2x8x1xf32>
    %cst_19 = arith.constant 1.000000e+00 : f32
    %46 = vector.broadcast %cst_19 : f32 to vector<2x8x1xf32>
    %47 = arith.divf %46, %45 : vector<2x8x1xf32>
    %48 = vector.broadcast %47 : vector<2x8x1xf32> to vector<2x8x8xf32>
    %49 = arith.mulf %43, %48 : vector<2x8x8xf32>
    "tpu.trace_start"() <{level = 10 : i32, message = "bqk,bkd->bqd"}> : () -> ()
    %cst_20 = arith.constant dense<0.000000e+00> : vector<2x8x8xf32>
    %50 = tpu.matmul %49, %37, %cst_20 {dimension_numbers = #tpu.dot_dimension_numbers<[2], [1], [1], [2], [0, 0, 0, 1, 1, 2], [0], [0]>} : vector<2x8x8xf32>, vector<2x8x8xf32>, vector<2x8x8xf32> -> vector<2x8x8xf32>
    "tpu.trace_stop"() : () -> ()
    %51 = vector.shape_cast %50 : vector<2x8x8xf32> to vector<16x8xf32>
    %c1 = arith.constant 1 : index
    %c0_21 = arith.constant 0 : index
    %c0_22 = arith.constant 0 : index
    %52 = vector.load %arg4[%c1, %c0_21, %c0_22] : memref<4x8x32xf32, #tpu.memory_space<vmem>>, vector<1x8x32xf32>
    %53 = vector.shape_cast %52 : vector<1x8x32xf32> to vector<8x32xf32>
    %cst_23 = arith.constant dense<0.000000e+00> : vector<16x32xf32>
    %54 = tpu.matmul %51, %53, %cst_23 {dimension_numbers = #tpu.dot_dimension_numbers<[1], [0], [0], [1], [0, 0, 1, 1], [], []>} : vector<16x8xf32>, vector<8x32xf32>, vector<16x32xf32> -> vector<16x32xf32>
    %55 = arith.addf %34, %54 : vector<16x32xf32>
    %56 = vector.extract_strided_slice %8 {offsets = [0, 0, 16], sizes = [2, 8, 8], strides = [1, 1, 1]} : vector<2x8x32xf32> to vector<2x8x8xf32>
    %57 = vector.extract_strided_slice %10 {offsets = [0, 0, 16], sizes = [2, 8, 8], strides = [1, 1, 1]} : vector<2x8x32xf32> to vector<2x8x8xf32>
    %58 = vector.extract_strided_slice %12 {offsets = [0, 0, 16], sizes = [2, 8, 8], strides = [1, 1, 1]} : vector<2x8x32xf32> to vector<2x8x8xf32>
    "tpu.trace_start"() <{level = 10 : i32, message = "bqd,bkd->bqk"}> : () -> ()
    %cst_24 = arith.constant dense<0.000000e+00> : vector<2x8x8xf32>
    %59 = tpu.matmul %56, %57, %cst_24 {dimension_numbers = #tpu.dot_dimension_numbers<[2], [2], [1], [1], [0, 0, 0, 1, 1, 1], [0], [0]>} : vector<2x8x8xf32>, vector<2x8x8xf32>, vector<2x8x8xf32> -> vector<2x8x8xf32>
    "tpu.trace_stop"() : () -> ()
    %cst_25 = arith.constant dense<0xFF800000> : vector<2x8xf32>
    %60 = vector.multi_reduction <maximumf>, %59, %cst_25 [2] : vector<2x8x8xf32> to vector<2x8xf32>
    %61 = vector.shape_cast %60 : vector<2x8xf32> to vector<2x8x1xf32>
    %62 = vector.broadcast %61 : vector<2x8x1xf32> to vector<2x8x8xf32>
    %63 = arith.subf %59, %62 : vector<2x8x8xf32>
    %64 = math.exp %63 : vector<2x8x8xf32>
    %cst_26 = arith.constant dense<0.000000e+00> : vector<2x8xf32>
    %65 = vector.multi_reduction <add>, %64, %cst_26 [2] : vector<2x8x8xf32> to vector<2x8xf32>
    %66 = vector.shape_cast %65 : vector<2x8xf32> to vector<2x8x1xf32>
    %cst_27 = arith.constant 1.000000e+00 : f32
    %67 = vector.broadcast %cst_27 : f32 to vector<2x8x1xf32>
    %68 = arith.divf %67, %66 : vector<2x8x1xf32>
    %69 = vector.broadcast %68 : vector<2x8x1xf32> to vector<2x8x8xf32>
    %70 = arith.mulf %64, %69 : vector<2x8x8xf32>
    "tpu.trace_start"() <{level = 10 : i32, message = "bqk,bkd->bqd"}> : () -> ()
    %cst_28 = arith.constant dense<0.000000e+00> : vector<2x8x8xf32>
    %71 = tpu.matmul %70, %58, %cst_28 {dimension_numbers = #tpu.dot_dimension_numbers<[2], [1], [1], [2], [0, 0, 0, 1, 1, 2], [0], [0]>} : vector<2x8x8xf32>, vector<2x8x8xf32>, vector<2x8x8xf32> -> vector<2x8x8xf32>
    "tpu.trace_stop"() : () -> ()
    %72 = vector.shape_cast %71 : vector<2x8x8xf32> to vector<16x8xf32>
    %c2 = arith.constant 2 : index
    %c0_29 = arith.constant 0 : index
    %c0_30 = arith.constant 0 : index
    %73 = vector.load %arg4[%c2, %c0_29, %c0_30] : memref<4x8x32xf32, #tpu.memory_space<vmem>>, vector<1x8x32xf32>
    %74 = vector.shape_cast %73 : vector<1x8x32xf32> to vector<8x32xf32>
    %cst_31 = arith.constant dense<0.000000e+00> : vector<16x32xf32>
    %75 = tpu.matmul %72, %74, %cst_31 {dimension_numbers = #tpu.dot_dimension_numbers<[1], [0], [0], [1], [0, 0, 1, 1], [], []>} : vector<16x8xf32>, vector<8x32xf32>, vector<16x32xf32> -> vector<16x32xf32>
    %76 = arith.addf %55, %75 : vector<16x32xf32>
    %77 = vector.extract_strided_slice %8 {offsets = [0, 0, 24], sizes = [2, 8, 8], strides = [1, 1, 1]} : vector<2x8x32xf32> to vector<2x8x8xf32>
    %78 = vector.extract_strided_slice %10 {offsets = [0, 0, 24], sizes = [2, 8, 8], strides = [1, 1, 1]} : vector<2x8x32xf32> to vector<2x8x8xf32>
    %79 = vector.extract_strided_slice %12 {offsets = [0, 0, 24], sizes = [2, 8, 8], strides = [1, 1, 1]} : vector<2x8x32xf32> to vector<2x8x8xf32>
    "tpu.trace_start"() <{level = 10 : i32, message = "bqd,bkd->bqk"}> : () -> ()
    %cst_32 = arith.constant dense<0.000000e+00> : vector<2x8x8xf32>
    %80 = tpu.matmul %77, %78, %cst_32 {dimension_numbers = #tpu.dot_dimension_numbers<[2], [2], [1], [1], [0, 0, 0, 1, 1, 1], [0], [0]>} : vector<2x8x8xf32>, vector<2x8x8xf32>, vector<2x8x8xf32> -> vector<2x8x8xf32>
    "tpu.trace_stop"() : () -> ()
    %cst_33 = arith.constant dense<0xFF800000> : vector<2x8xf32>
    %81 = vector.multi_reduction <maximumf>, %80, %cst_33 [2] : vector<2x8x8xf32> to vector<2x8xf32>
    %82 = vector.shape_cast %81 : vector<2x8xf32> to vector<2x8x1xf32>
    %83 = vector.broadcast %82 : vector<2x8x1xf32> to vector<2x8x8xf32>
    %84 = arith.subf %80, %83 : vector<2x8x8xf32>
    %85 = math.exp %84 : vector<2x8x8xf32>
    %cst_34 = arith.constant dense<0.000000e+00> : vector<2x8xf32>
    %86 = vector.multi_reduction <add>, %85, %cst_34 [2] : vector<2x8x8xf32> to vector<2x8xf32>
    %87 = vector.shape_cast %86 : vector<2x8xf32> to vector<2x8x1xf32>
    %cst_35 = arith.constant 1.000000e+00 : f32
    %88 = vector.broadcast %cst_35 : f32 to vector<2x8x1xf32>
    %89 = arith.divf %88, %87 : vector<2x8x1xf32>
    %90 = vector.broadcast %89 : vector<2x8x1xf32> to vector<2x8x8xf32>
    %91 = arith.mulf %85, %90 : vector<2x8x8xf32>
    "tpu.trace_start"() <{level = 10 : i32, message = "bqk,bkd->bqd"}> : () -> ()
    %cst_36 = arith.constant dense<0.000000e+00> : vector<2x8x8xf32>
    %92 = tpu.matmul %91, %79, %cst_36 {dimension_numbers = #tpu.dot_dimension_numbers<[2], [1], [1], [2], [0, 0, 0, 1, 1, 2], [0], [0]>} : vector<2x8x8xf32>, vector<2x8x8xf32>, vector<2x8x8xf32> -> vector<2x8x8xf32>
    "tpu.trace_stop"() : () -> ()
    %93 = vector.shape_cast %92 : vector<2x8x8xf32> to vector<16x8xf32>
    %c3 = arith.constant 3 : index
    %c0_37 = arith.constant 0 : index
    %c0_38 = arith.constant 0 : index
    %94 = vector.load %arg4[%c3, %c0_37, %c0_38] : memref<4x8x32xf32, #tpu.memory_space<vmem>>, vector<1x8x32xf32>
    %95 = vector.shape_cast %94 : vector<1x8x32xf32> to vector<8x32xf32>
    %cst_39 = arith.constant dense<0.000000e+00> : vector<16x32xf32>
    %96 = tpu.matmul %93, %95, %cst_39 {dimension_numbers = #tpu.dot_dimension_numbers<[1], [0], [0], [1], [0, 0, 1, 1], [], []>} : vector<16x8xf32>, vector<8x32xf32>, vector<16x32xf32> -> vector<16x32xf32>
    %97 = arith.addf %76, %96 : vector<16x32xf32>
    %c0_40 = arith.constant 0 : index
    %c0_41 = arith.constant 0 : index
    %98 = vector.load %arg5[%c0_40, %c0_41] : memref<1x32xf32, #tpu.memory_space<vmem>>, vector<1x32xf32>
    %99 = vector.broadcast %98 : vector<1x32xf32> to vector<16x32xf32>
    %100 = arith.addf %97, %99 : vector<16x32xf32>
    %101 = arith.addf %1, %100 : vector<16x32xf32>
    %c0_42 = arith.constant 0 : index
    %c0_43 = arith.constant 0 : index
    %102 = vector.load %arg6[%c0_42, %c0_43] : memref<1x32xf32, #tpu.memory_space<vmem>>, vector<1x32xf32>
    %c0_44 = arith.constant 0 : index
    %c0_45 = arith.constant 0 : index
    %103 = vector.load %arg7[%c0_44, %c0_45] : memref<1x32xf32, #tpu.memory_space<vmem>>, vector<1x32xf32>
    %cst_46 = arith.constant dense<0.000000e+00> : vector<16xf32>
    %104 = vector.multi_reduction <add>, %101, %cst_46 [1] : vector<16x32xf32> to vector<16xf32>
    %105 = vector.shape_cast %104 : vector<16xf32> to vector<16x1xf32>
    %cst_47 = arith.constant 3.200000e+01 : f32
    %106 = vector.broadcast %cst_47 : f32 to vector<16x1xf32>
    %107 = arith.divf %105, %106 : vector<16x1xf32>
    %108 = vector.broadcast %107 : vector<16x1xf32> to vector<16x32xf32>
    %109 = arith.subf %101, %108 : vector<16x32xf32>
    %110 = arith.mulf %109, %109 : vector<16x32xf32>
    %cst_48 = arith.constant dense<0.000000e+00> : vector<16xf32>
    %111 = vector.multi_reduction <add>, %110, %cst_48 [1] : vector<16x32xf32> to vector<16xf32>
    %112 = vector.shape_cast %111 : vector<16xf32> to vector<16x1xf32>
    %cst_49 = arith.constant 3.200000e+01 : f32
    %113 = vector.broadcast %cst_49 : f32 to vector<16x1xf32>
    %114 = arith.divf %112, %113 : vector<16x1xf32>
    %cst_50 = arith.constant 9.99999974E-6 : f32
    %115 = vector.broadcast %cst_50 : f32 to vector<16x1xf32>
    %116 = arith.addf %114, %115 : vector<16x1xf32>
    %117 = math.rsqrt %116 : vector<16x1xf32>
    %118 = vector.broadcast %117 : vector<16x1xf32> to vector<16x32xf32>
    %119 = arith.mulf %109, %118 : vector<16x32xf32>
    %120 = vector.broadcast %102 : vector<1x32xf32> to vector<16x32xf32>
    %121 = arith.mulf %119, %120 : vector<16x32xf32>
    %122 = vector.broadcast %103 : vector<1x32xf32> to vector<16x32xf32>
    %123 = arith.addf %121, %122 : vector<16x32xf32>
    %c0_51 = arith.constant 0 : index
    %c0_52 = arith.constant 0 : index
    %124 = vector.load %arg8[%c0_51, %c0_52] : memref<32x64xf32, #tpu.memory_space<vmem>>, vector<32x64xf32>
    %cst_53 = arith.constant dense<0.000000e+00> : vector<16x64xf32>
    %125 = tpu.matmul %123, %124, %cst_53 {dimension_numbers = #tpu.dot_dimension_numbers<[1], [0], [0], [1], [0, 0, 1, 1], [], []>} : vector<16x32xf32>, vector<32x64xf32>, vector<16x64xf32> -> vector<16x64xf32>
    %c0_54 = arith.constant 0 : index
    %c0_55 = arith.constant 0 : index
    %126 = vector.load %arg9[%c0_54, %c0_55] : memref<1x64xf32, #tpu.memory_space<vmem>>, vector<1x64xf32>
    %127 = vector.broadcast %126 : vector<1x64xf32> to vector<16x64xf32>
    %128 = arith.addf %125, %127 : vector<16x64xf32>
    %cst_56 = arith.constant 5.000000e-01 : f32
    %129 = vector.broadcast %cst_56 : f32 to vector<16x64xf32>
    %130 = arith.mulf %129, %128 : vector<16x64xf32>
    %cst_57 = arith.constant 0.707106769 : f32
    %131 = vector.broadcast %cst_57 : f32 to vector<16x64xf32>
    %132 = arith.mulf %128, %131 : vector<16x64xf32>
    %133 = math.absf %132 : vector<16x64xf32>
    %cst_58 = arith.constant 0.327591091 : f32
    %134 = vector.broadcast %cst_58 : f32 to vector<16x64xf32>
    %135 = arith.mulf %134, %133 : vector<16x64xf32>
    %cst_59 = arith.constant 1.000000e+00 : f32
    %136 = vector.broadcast %cst_59 : f32 to vector<16x64xf32>
    %137 = arith.addf %136, %135 : vector<16x64xf32>
    %cst_60 = arith.constant 1.000000e+00 : f32
    %138 = vector.broadcast %cst_60 : f32 to vector<16x64xf32>
    %139 = arith.divf %138, %137 : vector<16x64xf32>
    %cst_61 = arith.constant 1.06140542 : f32
    %140 = vector.broadcast %cst_61 : f32 to vector<16x64xf32>
    %141 = arith.mulf %140, %139 : vector<16x64xf32>
    %cst_62 = arith.constant -1.45315206 : f32
    %142 = vector.broadcast %cst_62 : f32 to vector<16x64xf32>
    %143 = arith.addf %141, %142 : vector<16x64xf32>
    %144 = arith.mulf %143, %139 : vector<16x64xf32>
    %cst_63 = arith.constant 1.42141378 : f32
    %145 = vector.broadcast %cst_63 : f32 to vector<16x64xf32>
    %146 = arith.addf %144, %145 : vector<16x64xf32>
    %147 = arith.mulf %146, %139 : vector<16x64xf32>
    %cst_64 = arith.constant -0.284496725 : f32
    %148 = vector.broadcast %cst_64 : f32 to vector<16x64xf32>
    %149 = arith.addf %147, %148 : vector<16x64xf32>
    %150 = arith.mulf %149, %139 : vector<16x64xf32>
    %cst_65 = arith.constant 0.254829586 : f32
    %151 = vector.broadcast %cst_65 : f32 to vector<16x64xf32>
    %152 = arith.addf %150, %151 : vector<16x64xf32>
    %153 = arith.mulf %152, %139 : vector<16x64xf32>
    %cst_66 = arith.constant 0.000000e+00 : f32
    %154 = vector.broadcast %cst_66 : f32 to vector<16x64xf32>
    %155 = arith.subf %154, %133 : vector<16x64xf32>
    %156 = arith.mulf %155, %133 : vector<16x64xf32>
    %157 = math.exp %156 : vector<16x64xf32>
    %158 = arith.mulf %153, %157 : vector<16x64xf32>
    %cst_67 = arith.constant 1.000000e+00 : f32
    %159 = vector.broadcast %cst_67 : f32 to vector<16x64xf32>
    %160 = arith.subf %159, %158 : vector<16x64xf32>
    %cst_68 = arith.constant 0.000000e+00 : f32
    %161 = vector.broadcast %cst_68 : f32 to vector<16x64xf32>
    %162 = arith.cmpf oge, %132, %161 : vector<16x64xf32>
    %cst_69 = arith.constant 0.000000e+00 : f32
    %163 = vector.broadcast %cst_69 : f32 to vector<16x64xf32>
    %164 = arith.subf %163, %160 : vector<16x64xf32>
    %165 = arith.select %162, %160, %164 : vector<16x64xi1>, vector<16x64xf32>
    %cst_70 = arith.constant 1.000000e+00 : f32
    %166 = vector.broadcast %cst_70 : f32 to vector<16x64xf32>
    %167 = arith.addf %166, %165 : vector<16x64xf32>
    %168 = arith.mulf %130, %167 : vector<16x64xf32>
    %c0_71 = arith.constant 0 : index
    %c0_72 = arith.constant 0 : index
    %169 = vector.load %arg10[%c0_71, %c0_72] : memref<64x32xf32, #tpu.memory_space<vmem>>, vector<64x32xf32>
    %cst_73 = arith.constant dense<0.000000e+00> : vector<16x32xf32>
    %170 = tpu.matmul %168, %169, %cst_73 {dimension_numbers = #tpu.dot_dimension_numbers<[1], [0], [0], [1], [0, 0, 1, 1], [], []>} : vector<16x64xf32>, vector<64x32xf32>, vector<16x32xf32> -> vector<16x32xf32>
    %c0_74 = arith.constant 0 : index
    %c0_75 = arith.constant 0 : index
    %171 = vector.load %arg11[%c0_74, %c0_75] : memref<1x32xf32, #tpu.memory_space<vmem>>, vector<1x32xf32>
    %172 = vector.broadcast %171 : vector<1x32xf32> to vector<16x32xf32>
    %173 = arith.addf %170, %172 : vector<16x32xf32>
    %174 = arith.addf %123, %173 : vector<16x32xf32>
    %c0_76 = arith.constant 0 : index
    %c0_77 = arith.constant 0 : index
    %175 = vector.load %arg12[%c0_76, %c0_77] : memref<1x32xf32, #tpu.memory_space<vmem>>, vector<1x32xf32>
    %c0_78 = arith.constant 0 : index
    %c0_79 = arith.constant 0 : index
    %176 = vector.load %arg13[%c0_78, %c0_79] : memref<1x32xf32, #tpu.memory_space<vmem>>, vector<1x32xf32>
    %cst_80 = arith.constant dense<0.000000e+00> : vector<16xf32>
    %177 = vector.multi_reduction <add>, %174, %cst_80 [1] : vector<16x32xf32> to vector<16xf32>
    %178 = vector.shape_cast %177 : vector<16xf32> to vector<16x1xf32>
    %cst_81 = arith.constant 3.200000e+01 : f32
    %179 = vector.broadcast %cst_81 : f32 to vector<16x1xf32>
    %180 = arith.divf %178, %179 : vector<16x1xf32>
    %181 = vector.broadcast %180 : vector<16x1xf32> to vector<16x32xf32>
    %182 = arith.subf %174, %181 : vector<16x32xf32>
    %183 = arith.mulf %182, %182 : vector<16x32xf32>
    %cst_82 = arith.constant dense<0.000000e+00> : vector<16xf32>
    %184 = vector.multi_reduction <add>, %183, %cst_82 [1] : vector<16x32xf32> to vector<16xf32>
    %185 = vector.shape_cast %184 : vector<16xf32> to vector<16x1xf32>
    %cst_83 = arith.constant 3.200000e+01 : f32
    %186 = vector.broadcast %cst_83 : f32 to vector<16x1xf32>
    %187 = arith.divf %185, %186 : vector<16x1xf32>
    %cst_84 = arith.constant 9.99999974E-6 : f32
    %188 = vector.broadcast %cst_84 : f32 to vector<16x1xf32>
    %189 = arith.addf %187, %188 : vector<16x1xf32>
    %190 = math.rsqrt %189 : vector<16x1xf32>
    %191 = vector.broadcast %190 : vector<16x1xf32> to vector<16x32xf32>
    %192 = arith.mulf %182, %191 : vector<16x32xf32>
    %193 = vector.broadcast %175 : vector<1x32xf32> to vector<16x32xf32>
    %194 = arith.mulf %192, %193 : vector<16x32xf32>
    %195 = vector.broadcast %176 : vector<1x32xf32> to vector<16x32xf32>
    %196 = arith.addf %194, %195 : vector<16x32xf32>
    %197 = vector.shape_cast %196 : vector<16x32xf32> to vector<2x8x32xf32>
    %c0_85 = arith.constant 0 : index
    %c0_86 = arith.constant 0 : index
    %c0_87 = arith.constant 0 : index
    %198 = vector.load %arg14[%c0_85, %c0_86, %c0_87] : memref<2x8x32xf32, #tpu.memory_space<vmem>>, vector<2x8x32xf32>
    tpu.vector_store %arg14[%c0_85, %c0_86, %c0_87], %197 {strides = array<i32>} : memref<2x8x32xf32, #tpu.memory_space<vmem>>, vector<2x8x32xf32>,
    return
  }
  func.func @transform_0(%arg0: i32) -> (i32, i32, i32) {
    %c0_i32 = arith.constant 0 : i32
    %c0_i32_0 = arith.constant 0 : i32
    %c0_i32_1 = arith.constant 0 : i32
    return %arg0, %c0_i32, %c0_i32_0 : i32, i32, i32
  }
  func.func @transform_1(%arg0: i32) -> (i32, i32) {
    %c0_i32 = arith.constant 0 : i32
    %c0_i32_0 = arith.constant 0 : i32
    %c0_i32_1 = arith.constant 0 : i32
    return %c0_i32, %c0_i32_0 : i32, i32
  }
  func.func @transform_2(%arg0: i32) -> (i32, i32) {
    %c0_i32 = arith.constant 0 : i32
    %c0_i32_0 = arith.constant 0 : i32
    %c0_i32_1 = arith.constant 0 : i32
    return %c0_i32, %c0_i32_0 : i32, i32
  }
  func.func @transform_3(%arg0: i32) -> (i32, i32, i32) {
    %c0_i32 = arith.constant 0 : i32
    %c0_i32_0 = arith.constant 0 : i32
    %c0_i32_1 = arith.constant 0 : i32
    %c0_i32_2 = arith.constant 0 : i32
    return %c0_i32, %c0_i32_0, %c0_i32_1 : i32, i32, i32
  }
  func.func @transform_4(%arg0: i32) -> (i32, i32) {
    %c0_i32 = arith.constant 0 : i32
    %c0_i32_0 = arith.constant 0 : i32
    %c0_i32_1 = arith.constant 0 : i32
    return %c0_i32, %c0_i32_0 : i32, i32
  }
  func.func @transform_5(%arg0: i32) -> (i32, i32) {
    %c0_i32 = arith.constant 0 : i32
    %c0_i32_0 = arith.constant 0 : i32
    %c0_i32_1 = arith.constant 0 : i32
    return %c0_i32, %c0_i32_0 : i32, i32
  }
  func.func @transform_6(%arg0: i32) -> (i32, i32) {
    %c0_i32 = arith.constant 0 : i32
    %c0_i32_0 = arith.constant 0 : i32
    %c0_i32_1 = arith.constant 0 : i32
    return %c0_i32, %c0_i32_0 : i32, i32
  }
  func.func @transform_7(%arg0: i32) -> (i32, i32) {
    %c0_i32 = arith.constant 0 : i32
    %c0_i32_0 = arith.constant 0 : i32
    %c0_i32_1 = arith.constant 0 : i32
    return %c0_i32, %c0_i32_0 : i32, i32
  }
  func.func @transform_8(%arg0: i32) -> (i32, i32) {
    %c0_i32 = arith.constant 0 : i32
    %c0_i32_0 = arith.constant 0 : i32
    %c0_i32_1 = arith.constant 0 : i32
    return %c0_i32, %c0_i32_0 : i32, i32
  }
  func.func @transform_9(%arg0: i32) -> (i32, i32) {
    %c0_i32 = arith.constant 0 : i32
    %c0_i32_0 = arith.constant 0 : i32
    %c0_i32_1 = arith.constant 0 : i32
    return %c0_i32, %c0_i32_0 : i32, i32
  }
  func.func @transform_10(%arg0: i32) -> (i32, i32) {
    %c0_i32 = arith.constant 0 : i32
    %c0_i32_0 = arith.constant 0 : i32
    %c0_i32_1 = arith.constant 0 : i32
    return %c0_i32, %c0_i32_0 : i32, i32
  }
  func.func @transform_11(%arg0: i32) -> (i32, i32) {
    %c0_i32 = arith.constant 0 : i32
    %c0_i32_0 = arith.constant 0 : i32
    %c0_i32_1 = arith.constant 0 : i32
    return %c0_i32, %c0_i32_0 : i32, i32
  }
  func.func @transform_12(%arg0: i32) -> (i32, i32) {
    %c0_i32 = arith.constant 0 : i32
    %c0_i32_0 = arith.constant 0 : i32
    %c0_i32_1 = arith.constant 0 : i32
    return %c0_i32, %c0_i32_0 : i32, i32
  }
  func.func @transform_13(%arg0: i32) -> (i32, i32, i32) {
    %c0_i32 = arith.constant 0 : i32
    %c0_i32_0 = arith.constant 0 : i32
    %c0_i32_1 = arith.constant 0 : i32
    return %arg0, %c0_i32, %c0_i32_0 : i32, i32, i32
  }
}

</mosaic_0001>

<bundles_post_ra>
// kernel: tpu_custom_call.1
= control target key start
LH: loop header
LB: loop body
LE: loop exit
PB: predicated region body
PF: predicated region fallthrough
CT: control target
= control target key end

     0   :  { %18 = vsyncpa [#allocation3], 0  ;;  %s3487_s0 = inlined_call_operand.hbm [shape: f32[2,8,32], index: 0, kind: input, shape index: {}]   ;;  %s3488_s1 = inlined_call_operand.hbm [shape: f32[32,96], index: 1, kind: input, shape index: {}]   ;;  %s3489_s2 = inlined_call_operand.hbm [shape: f32[1,96], index: 2, kind: input, shape index: {}]   ;;  %s3490_s3 = inlined_call_operand.hbm [shape: f32[4,8,32], index: 3, kind: input, shape index: {}]   ;;  %s3491_s4 = inlined_call_operand.hbm [shape: f32[1,32], index: 4, kind: input, shape index: {}]   ;;  %s3492_s5 = inlined_call_operand.hbm [shape: f32[1,32], index: 5, kind: input, shape index: {}]   ;;  %s3493_s6 = inlined_call_operand.hbm [shape: f32[1,32], index: 6, kind: input, shape index: {}]   ;;  %s3494_s7 = inlined_call_operand.hbm [shape: f32[32,64], index: 7, kind: input, shape index: {}]   ;;  %s3495_s8 = inlined_call_operand.hbm [shape: f32[1,64], index: 8, kind: input, shape index: {}]   ;;  %s3496_s9 = inlined_call_operand.hbm [shape: f32[64,32], index: 9, kind: input, shape index: {}]   ;;  %s3497_s10 = inlined_call_operand.hbm [shape: f32[1,32], index: 10, kind: input, shape index: {}]   ;;  %s3498_s11 = inlined_call_operand.hbm [shape: f32[1,32], index: 11, kind: input, shape index: {}]   ;;  %s3499_s12 = inlined_call_operand.hbm [shape: f32[1,32], index: 12, kind: input, shape index: {}]   ;;  %s3500_s13 = inlined_call_operand.hbm [shape: f32[2,8,32], index: 13, kind: output, shape index: {}]  }
   0x1   :  { %19 = vsyncpa [#allocation6], 0 }
   0x2   :  { %20 = vsyncpa [#allocation9], 0 }
   0x3   :  { %21 = vsyncpa [#allocation12], 0 }
   0x4   :  { %22 = vsyncpa [#allocation15], 0 }
   0x5   :  { %23 = vsyncpa [#allocation18], 0 }
   0x6   :  { %24 = vsyncpa [#allocation21], 0 }
   0x7   :  { %25 = vsyncpa [#allocation4], 0  ;;  %s3024_s25 = smov [#allocation5]   ;;  %s3025_s27 = smov [#allocation8]  }
   0x8   :  { %s43_s26 = sshll.u32 %s3024_s25, 4  ;;  %s65_s28 = sshll.u32 %s3025_s27, 4  ;;  %s44_s26 = int_to_ptr.vmem [resolvable:$true] %s43_s26  ;;  %s3123_s28 = int_to_ptr.vmem [resolvable:$true] %s65_s28 }
   0x9   :  { %s2700_s14 = scalar_lea.hbm %s3488_s1, 512 }
   0xa   :  { %p2701_p0 = scmp.ne.s32.totalorder %s3488_s1, %s2700_s14  ;;  %p2704_p1 = scmp.lt.u32.totalorder %s2700_s14, %s3488_s1 }
   0xc   :  { %p2706_p2 = pnand %p2704_p1, %p2701_p0 }
   0xe   :  { %2709 = shalt.err (!%p2706_p2)
}
   0xf   :  { %s2710_s19 = scalar_lea.vmem %s44_s26, 512  ;;  %p2715_p4 = scmp.lt.s32.totalorder %s44_s26, %s44_s26 }
  0x10   :  { %p2711_p3 = scmp.ne.s32.totalorder %s44_s26, %s2710_s19  ;;  %p2716_p5 = scmp.lt.s32.totalorder %s2710_s19, %s2710_s19 }
  0x12   :  { %p2717_p6 = por %p2716_p5, %p2715_p4 }
  0x14   :  { %p2718_p7 = pnand %p2717_p6, %p2711_p3 }
  0x16   :  { %2721 = shalt.err (!%p2718_p7)
}
  0x17   :  { %s3026_s20 = smov 128   ;;  %s3027_s21 = smov 8  }
  0x18   :  { %49 = dma.hbm_to_vmem [thread:$0]  %s3488_s1, 512, %s44_s26, [#allocation6], %s3026_s20, %s3026_s20, %s3027_s21  }
  0x19   :  { %s2722_s27 = scalar_lea.hbm %s3490_s3, 512 }
  0x1a   :  { %p2723_p8 = scmp.ne.s32.totalorder %s3490_s3, %s2722_s27  ;;  %p2726_p9 = scmp.lt.u32.totalorder %s2722_s27, %s3490_s3 }
  0x1c   :  { %p2728_p10 = pnand %p2726_p9, %p2723_p8 }
  0x1e   :  { %2731 = shalt.err (!%p2728_p10)
}
  0x1f   :  { %s2732_s16 = scalar_lea.vmem %s3123_s28, 512  ;;  %p2737_p12 = scmp.lt.s32.totalorder %s3123_s28, %s3123_s28 }
  0x20   :  { %p2733_p11 = scmp.ne.s32.totalorder %s3123_s28, %s2732_s16  ;;  %p2738_p13 = scmp.lt.s32.totalorder %s2732_s16, %s2732_s16 }
  0x22   :  { %p2739_p0 = por %p2738_p13, %p2737_p12 }
  0x24   :  { %p2740_p1 = pnand %p2739_p0, %p2733_p11 }
  0x26   :  { %2743 = shalt.err (!%p2740_p1)
}
  0x27   :  { %71 = dma.hbm_to_vmem [thread:$0]  %s3490_s3, 512, %s3123_s28, [#allocation9], %s3026_s20, %s3026_s20, %s3027_s21  }
  0x28   :  { %s3028_s17 = smov [#allocation11]   ;;  %s3029_s19 = smov [#allocation14]  }
  0x29   :  { %s88_s18 = sshll.u32 %s3028_s17, 4  ;;  %s107_s22 = sshll.u32 %s3029_s19, 4  ;;  %s89_s18 = int_to_ptr.vmem [resolvable:$true] %s88_s18  ;;  %s3160_s22 = int_to_ptr.vmem [resolvable:$true] %s107_s22 }
  0x2a   :  { %s2744_s25 = scalar_lea.hbm %s3492_s5, 16 }
  0x2b   :  { %p2745_p2 = scmp.ne.s32.totalorder %s3492_s5, %s2744_s25  ;;  %p2748_p3 = scmp.lt.u32.totalorder %s2744_s25, %s3492_s5 }
  0x2d   :  { %p2750_p4 = pnand %p2748_p3, %p2745_p2 }
  0x2f   :  { %2753 = shalt.err (!%p2750_p4)
}
  0x30   :  { %s2754_s3 = scalar_lea.vmem %s89_s18, 16  ;;  %s2758_s28 = scalar_lea.vmem %s89_s18, 32 }
  0x31   :  { %p2755_p5 = scmp.ne.s32.totalorder %s89_s18, %s2754_s3  ;;  %p2759_p6 = scmp.lt.s32.totalorder %s89_s18, %s89_s18 }
  0x32   :  { %p2760_p7 = scmp.lt.s32.totalorder %s2758_s28, %s2754_s3 }
  0x34   :  { %p2761_p8 = por %p2760_p7, %p2759_p6 }
  0x36   :  { %p2762_p9 = pnand %p2761_p8, %p2755_p5 }
  0x38   :  { %2765 = shalt.err (!%p2762_p9)
}
  0x39   :  { %91 = dma.hbm_to_vmem [thread:$0]  %s3492_s5, 16, %s89_s18, [#allocation12]  }
  0x3a   :  { %s2766_s17 = scalar_lea.hbm %s3494_s7, 512 }
  0x3b   :  { %p2767_p10 = scmp.ne.s32.totalorder %s3494_s7, %s2766_s17  ;;  %p2770_p11 = scmp.lt.u32.totalorder %s2766_s17, %s3494_s7 }
  0x3d   :  { %p2772_p12 = pnand %p2770_p11, %p2767_p10 }
  0x3f   :  { %2775 = shalt.err (!%p2772_p12)
}
  0x40   :  { %s2776_s27 = scalar_lea.vmem %s3160_s22, 512  ;;  %p2781_p0 = scmp.lt.s32.totalorder %s3160_s22, %s3160_s22 }
  0x41   :  { %p2777_p13 = scmp.ne.s32.totalorder %s3160_s22, %s2776_s27  ;;  %p2782_p1 = scmp.lt.s32.totalorder %s2776_s27, %s2776_s27 }
  0x43   :  { %p2783_p2 = por %p2782_p1, %p2781_p0 }
  0x45   :  { %p2784_p3 = pnand %p2783_p2, %p2777_p13 }
  0x47   :  { %2787 = shalt.err (!%p2784_p3)
}
  0x48   :  { %113 = dma.hbm_to_vmem [thread:$0]  %s3494_s7, 512, %s3160_s22, [#allocation15], %s3026_s20, %s3026_s20, %s3027_s21  }
  0x49   :  { %s3030_s29 = smov [#allocation17]   ;;  %s3031_s14 = smov [#allocation20]  }
  0x4a   :  { %s129_s30 = sshll.u32 %s3030_s29, 4  ;;  %s152_s3 = sshll.u32 %s3031_s14, 4  ;;  %s130_s30 = int_to_ptr.vmem [resolvable:$true] %s129_s30  ;;  %s153_s3 = int_to_ptr.vmem [resolvable:$true] %s152_s3 }
  0x4b   :  { %s2788_s16 = scalar_lea.hbm %s3496_s9, 1024 }
  0x4c   :  { %p2789_p4 = scmp.ne.s32.totalorder %s3496_s9, %s2788_s16  ;;  %p2792_p5 = scmp.lt.u32.totalorder %s2788_s16, %s3496_s9 }
  0x4e   :  { %p2794_p6 = pnand %p2792_p5, %p2789_p4 }
  0x50   :  { %2797 = shalt.err (!%p2794_p6)
}
  0x51   :  { %s2798_s7 = scalar_lea.vmem %s130_s30, 1024  ;;  %p2803_p8 = scmp.lt.s32.totalorder %s130_s30, %s130_s30 }
  0x52   :  { %p2799_p7 = scmp.ne.s32.totalorder %s130_s30, %s2798_s7  ;;  %p2804_p9 = scmp.lt.s32.totalorder %s2798_s7, %s2798_s7 }
  0x54   :  { %p2805_p10 = por %p2804_p9, %p2803_p8 }
  0x56   :  { %p2806_p11 = pnand %p2805_p10, %p2799_p7 }
  0x58   :  { %2809 = shalt.err (!%p2806_p11)
}
  0x59   :  { %135 = dma.hbm_to_vmem [thread:$0]  %s3496_s9, 1024, %s130_s30, [#allocation18], %s3026_s20, %s3026_s20, %s3027_s21  }
  0x5a   :  { %s2810_s27 = scalar_lea.hbm %s3498_s11, 16 }
  0x5b   :  { %p2811_p12 = scmp.ne.s32.totalorder %s3498_s11, %s2810_s27  ;;  %p2814_p13 = scmp.lt.u32.totalorder %s2810_s27, %s3498_s11 }
  0x5d   :  { %p2816_p0 = pnand %p2814_p13, %p2811_p12 }
  0x5f   :  { %2819 = shalt.err (!%p2816_p0)
}
  0x60   :  { %s2820_s28 = scalar_lea.vmem %s153_s3, 16  ;;  %s2824_s15 = scalar_lea.vmem %s153_s3, 32 }
  0x61   :  { %p2821_p1 = scmp.ne.s32.totalorder %s153_s3, %s2820_s28  ;;  %p2825_p2 = scmp.lt.s32.totalorder %s153_s3, %s153_s3 }
  0x62   :  { %p2826_p3 = scmp.lt.s32.totalorder %s2824_s15, %s2820_s28 }
  0x64   :  { %p2827_p4 = por %p2826_p3, %p2825_p2 }
  0x66   :  { %p2828_p5 = pnand %p2827_p4, %p2821_p1 }
  0x68   :  { %2831 = shalt.err (!%p2828_p5)
}
  0x69   :  { %155 = dma.hbm_to_vmem [thread:$0]  %s3498_s11, 16, %s153_s3, [#allocation21]  }
  0x6a   :  { %s3032_s16 = smov [#allocation2]   ;;  %s3033_s26 = smov [#allocation7]  }
  0x6b   :  { %s31_s1 = sshll.u32 %s3032_s16, 4  ;;  %s56_s17 = sshll.u32 %s3033_s26, 4  ;;  %s32_s1 = int_to_ptr.vmem [resolvable:$true] %s31_s1  ;;  %s57_s17 = int_to_ptr.vmem [resolvable:$true] %s56_s17 }
  0x6c   :  { %s2832_s22 = scalar_lea.hbm %s3487_s0, 256 }
  0x6d   :  { %p2833_p6 = scmp.ne.s32.totalorder %s3487_s0, %s2832_s22  ;;  %p2836_p7 = scmp.lt.u32.totalorder %s2832_s22, %s3487_s0 }
  0x6f   :  { %p2838_p8 = pnand %p2836_p7, %p2833_p6 }
  0x71   :  { %2841 = shalt.err (!%p2838_p8)
}
  0x72   :  { %s2842_s11 = scalar_lea.vmem %s32_s1, 256  ;;  %p2847_p10 = scmp.lt.s32.totalorder %s32_s1, %s32_s1 }
  0x73   :  { %p2843_p9 = scmp.ne.s32.totalorder %s32_s1, %s2842_s11  ;;  %p2848_p11 = scmp.lt.s32.totalorder %s2842_s11, %s2842_s11 }
  0x75   :  { %p2849_p12 = por %p2848_p11, %p2847_p10 }
  0x77   :  { %p2850_p13 = pnand %p2849_p12, %p2843_p9 }
  0x79   :  { %2853 = shalt.err (!%p2850_p13)
}
  0x7a   :  { %37 = dma.hbm_to_vmem [thread:$0]  %s3487_s0, 256, %s32_s1, [#allocation3], %s3026_s20, %s3026_s20, %s3027_s21  }
  0x7b   :  { %s2854_s14 = scalar_lea.hbm %s3489_s2, 16 }
  0x7c   :  { %p2855_p0 = scmp.ne.s32.totalorder %s3489_s2, %s2854_s14  ;;  %p2858_p1 = scmp.lt.u32.totalorder %s2854_s14, %s3489_s2 }
  0x7e   :  { %p2860_p2 = pnand %p2858_p1, %p2855_p0 }
  0x80   :  { %2863 = shalt.err (!%p2860_p2)
}
  0x81   :  { %s2864_s16 = scalar_lea.vmem %s57_s17, 16  ;;  %s2868_s26 = scalar_lea.vmem %s57_s17, 32 }
  0x82   :  { %p2865_p3 = scmp.ne.s32.totalorder %s57_s17, %s2864_s16  ;;  %p2869_p4 = scmp.lt.s32.totalorder %s57_s17, %s57_s17 }
  0x83   :  { %p2870_p5 = scmp.lt.s32.totalorder %s2868_s26, %s2864_s16 }
  0x85   :  { %p2871_p6 = por %p2870_p5, %p2869_p4 }
  0x87   :  { %p2872_p7 = pnand %p2871_p6, %p2865_p3 }
  0x89   :  { %2875 = shalt.err (!%p2872_p7)
}
  0x8a   :  { %59 = dma.hbm_to_vmem [thread:$0]  %s3489_s2, 16, %s57_s17, [#allocation6]  }
  0x8b   :  { %s3034_s19 = smov [#allocation10]   ;;  %s3035_s22 = smov [#allocation13]  }
  0x8c   :  { %s78_s7 = sshll.u32 %s3034_s19, 4  ;;  %s98_s23 = sshll.u32 %s3035_s22, 4  ;;  %s79_s7 = int_to_ptr.vmem [resolvable:$true] %s78_s7  ;;  %s99_s23 = int_to_ptr.vmem [resolvable:$true] %s98_s23 }
  0x8d   :  { %s2876_s27 = scalar_lea.hbm %s3491_s4, 16 }
  0x8e   :  { %p2877_p8 = scmp.ne.s32.totalorder %s3491_s4, %s2876_s27  ;;  %p2880_p9 = scmp.lt.u32.totalorder %s2876_s27, %s3491_s4 }
  0x90   :  { %p2882_p10 = pnand %p2880_p9, %p2877_p8 }
  0x92   :  { %2885 = shalt.err (!%p2882_p10)
}
  0x93   :  { %s2886_s2 = scalar_lea.vmem %s79_s7, 16  ;;  %s2890_s17 = scalar_lea.vmem %s79_s7, 32 }
  0x94   :  { %p2887_p11 = scmp.ne.s32.totalorder %s79_s7, %s2886_s2  ;;  %p2891_p12 = scmp.lt.s32.totalorder %s79_s7, %s79_s7 }
  0x95   :  { %p2892_p13 = scmp.lt.s32.totalorder %s2890_s17, %s2886_s2 }
  0x97   :  { %p2893_p0 = por %p2892_p13, %p2891_p12 }
  0x99   :  { %p2894_p1 = pnand %p2893_p0, %p2887_p11 }
  0x9b   :  { %2897 = shalt.err (!%p2894_p1)
}
  0x9c   :  { %81 = dma.hbm_to_vmem [thread:$0]  %s3491_s4, 16, %s79_s7, [#allocation9]  }
  0x9d   :  { %s2898_s9 = scalar_lea.hbm %s3493_s6, 16 }
  0x9e   :  { %p2899_p2 = scmp.ne.s32.totalorder %s3493_s6, %s2898_s9  ;;  %p2902_p3 = scmp.lt.u32.totalorder %s2898_s9, %s3493_s6 }
  0xa0   :  { %p2904_p4 = pnand %p2902_p3, %p2899_p2 }
  0xa2   :  { %2907 = shalt.err (!%p2904_p4)
}
  0xa3   :  { %s2908_s1 = scalar_lea.vmem %s99_s23, 16  ;;  %s2912_s19 = scalar_lea.vmem %s99_s23, 32 }
  0xa4   :  { %p2909_p5 = scmp.ne.s32.totalorder %s99_s23, %s2908_s1  ;;  %p2913_p6 = scmp.lt.s32.totalorder %s99_s23, %s99_s23 }
  0xa5   :  { %p2914_p7 = scmp.lt.s32.totalorder %s2912_s19, %s2908_s1 }
  0xa7   :  { %p2915_p8 = por %p2914_p7, %p2913_p6 }
  0xa9   :  { %p2916_p9 = pnand %p2915_p8, %p2909_p5 }
  0xab   :  { %2919 = shalt.err (!%p2916_p9)
}
  0xac   :  { %101 = dma.hbm_to_vmem [thread:$0]  %s3493_s6, 16, %s99_s23, [#allocation12]  }
  0xad   :  { %s3036_s22 = smov [#allocation16]   ;;  %s3037_s25 = smov [#allocation19]  }
  0xae   :  { %s120_s24 = sshll.u32 %s3036_s22, 4  ;;  %s142_s27 = sshll.u32 %s3037_s25, 4  ;;  %s121_s24 = int_to_ptr.vmem [resolvable:$true] %s120_s24  ;;  %s143_s27 = int_to_ptr.vmem [resolvable:$true] %s142_s27 }
  0xaf   :  { %s2920_s5 = scalar_lea.hbm %s3495_s8, 16 }
  0xb0   :  { %p2921_p10 = scmp.ne.s32.totalorder %s3495_s8, %s2920_s5  ;;  %p2924_p11 = scmp.lt.u32.totalorder %s2920_s5, %s3495_s8 }
  0xb2   :  { %p2926_p12 = pnand %p2924_p11, %p2921_p10 }
  0xb4   :  { %2929 = shalt.err (!%p2926_p12)
}
  0xb5   :  { %s2930_s6 = scalar_lea.vmem %s121_s24, 16  ;;  %s2934_s23 = scalar_lea.vmem %s121_s24, 32 }
  0xb6   :  { %p2931_p13 = scmp.ne.s32.totalorder %s121_s24, %s2930_s6  ;;  %p2935_p0 = scmp.lt.s32.totalorder %s121_s24, %s121_s24 }
  0xb7   :  { %p2936_p1 = scmp.lt.s32.totalorder %s2934_s23, %s2930_s6 }
  0xb9   :  { %p2937_p2 = por %p2936_p1, %p2935_p0 }
  0xbb   :  { %p2938_p3 = pnand %p2937_p2, %p2931_p13 }
  0xbd   :  { %2941 = shalt.err (!%p2938_p3)
}
  0xbe   :  { %123 = dma.hbm_to_vmem [thread:$0]  %s3495_s8, 16, %s121_s24, [#allocation15]  }
  0xbf   :  { %s2942_s30 = scalar_lea.hbm %s3497_s10, 16 }
  0xc0   :  { %p2943_p4 = scmp.ne.s32.totalorder %s3497_s10, %s2942_s30  ;;  %p2946_p5 = scmp.lt.u32.totalorder %s2942_s30, %s3497_s10 }
  0xc2   :  { %p2948_p6 = pnand %p2946_p5, %p2943_p4 }
  0xc4   :  { %2951 = shalt.err (!%p2948_p6)
}
  0xc5   :  { %s2952_s19 = scalar_lea.vmem %s143_s27, 16  ;;  %s2956_s4 = scalar_lea.vmem %s143_s27, 32 }
  0xc6   :  { %p2953_p7 = scmp.ne.s32.totalorder %s143_s27, %s2952_s19  ;;  %p2957_p8 = scmp.lt.s32.totalorder %s143_s27, %s143_s27 }
  0xc7   :  { %p2958_p9 = scmp.lt.s32.totalorder %s2956_s4, %s2952_s19 }
  0xc9   :  { %p2959_p10 = por %p2958_p9, %p2957_p8 }
  0xcb   :  { %p2960_p11 = pnand %p2959_p10, %p2953_p7 }
  0xcd   :  { %2963 = shalt.err (!%p2960_p11)
}
  0xce   :  { %145 = dma.hbm_to_vmem [thread:$0]  %s3497_s10, 16, %s143_s27, [#allocation18]  }
  0xcf   :  { %s3038_s22 = smov [#allocation22]   ;;  %s2964_s3 = scalar_lea.hbm %s3499_s12, 16 }
  0xd0   :  { %s162_s24 = sshll.u32 %s3038_s22, 4  ;;  %p2965_p12 = scmp.ne.s32.totalorder %s3499_s12, %s2964_s3  ;;  %s163_s24 = int_to_ptr.vmem [resolvable:$true] %s162_s24 }
  0xd1   :  { %p2968_p13 = scmp.lt.u32.totalorder %s2964_s3, %s3499_s12 }
  0xd3   :  { %p2970_p0 = pnand %p2968_p13, %p2965_p12 }
  0xd5   :  { %2973 = shalt.err (!%p2970_p0)
}
  0xd6   :  { %s2974_s29 = scalar_lea.vmem %s163_s24, 16  ;;  %s2978_s10 = scalar_lea.vmem %s163_s24, 32 }
  0xd7   :  { %p2975_p1 = scmp.ne.s32.totalorder %s163_s24, %s2974_s29  ;;  %p2979_p2 = scmp.lt.s32.totalorder %s163_s24, %s163_s24 }
  0xd8   :  { %p2980_p3 = scmp.lt.s32.totalorder %s2978_s10, %s2974_s29 }
  0xda   :  { %p2981_p4 = por %p2980_p3, %p2979_p2 }
  0xdc   :  { %p2982_p5 = pnand %p2981_p4, %p2975_p1 }
  0xde   :  { %2985 = shalt.err (!%p2982_p5)
}
  0xdf   :  { %165 = dma.hbm_to_vmem [thread:$0]  %s3499_s12, 16, %s163_s24, [#allocation21]  }
  0xe0   :  { %3008 = dma.done.wait [#allocation3], 256  }
  0xe1   :  { %3009 = vsyncadd [#allocation3], 4294967040 }
  0xe2   :  { %3010 = dma.done.wait [#allocation6], 528  }
  0xe3   :  { %3011 = vsyncadd [#allocation6], 4294966768 }
  0xe4   :  { %3012 = dma.done.wait [#allocation9], 528  }
  0xe5   :  { %3013 = vsyncadd [#allocation9], 4294966768 }
  0xe6   :  { %3014 = dma.done.wait [#allocation12], 32  }
  0xe7   :  { %3015 = vsyncadd [#allocation12], 4294967264 }
  0xe8   :  { %3016 = dma.done.wait [#allocation15], 528  }
  0xe9   :  { %3017 = vsyncadd [#allocation15], 4294966768 }
  0xea   :  { %3018 = dma.done.wait [#allocation18], 1040  }
  0xeb   :  { %3019 = vsyncadd [#allocation18], 4294966256 }
  0xec   :  { %3020 = dma.done.wait [#allocation21], 32  }
  0xed   :  { %3021 = vsyncadd [#allocation21], 4294967264  ;;  %vm218_vm0 = vcmask 261120   ;;  %v207_v0 = vld [vmem:[#allocation5] sm:$0xff]  ;;  %v208_v1 = vld [vmem:[#allocation5 + $0x8] sm:$0xff]  ;;  %v3039_v8 = vmov 0.0  }
  0xee   :  { %v209_v2 = vld [vmem:[#allocation5 + $0x10] sm:$0xff]  ;;  %v2585_v3 = vpack.c.bf16 %v208_v1, %v207_v0  ;;  %v210_v4 = vld [vmem:[#allocation5 + $0x18] sm:$0xff]  ;;  %2465 = vmatprep.subr.mxu0 %v3039_v8  ;;  %vm3040_vm1 = vmmov 0   ;;  %v2332_v9 = vld [vmem:[#allocation7] ss:$0 sm:$0xff]  ;;  %s3041_s12 = smov 96  }
  0xef   :  { %v3308_v5 = vld [vmem:[#allocation2] sm:$0xff]  ;;  %v2589_v6 = vpack.c.bf16 %v210_v4, %v209_v2  ;;  %v3312_v7 = vld [vmem:[#allocation2 + $0x8] sm:$0xff]  ;;  %2467 = vmatprep.mubr.msk.f32.mxu0 %vm3040_vm1, %v3039_v8  ;;  %s3042_s23 = smov 64   ;;  %s3043_s14 = smov 120   ;;  %vm303_vm2 = vcmask 64512   ;;  %vm2179_vm5 = vcmask 523264  }
  0xf0   :  { %2452 = vmatprep.mubr.msk.f32.mxu1 %vm218_vm0, %v3308_v5  ;;  %2586 = vmatprep.subr.bf16.mxu1 %v2585_v3  ;;  %s3044_s28 = smov 88   ;;  %s3045_s15 = smov 80  }
  0xf1   :  { %2588 = vmatpush3.bf16.msra.mxu1 %v2585_v3  ;;  %s3046_s9 = smov 56   ;;  %s3047_s30 = smov 112  }
  0xf2   :  { %2590 = vmatprep.subr.bf16.mxu1 %v2589_v6  ;;  %s3048_s16 = smov 48   ;;  %s3049_s26 = smov 72  }
  0xf3   :  { %s3050_s0 = smov 104   ;;  %s3051_s1 = smov 40  }
  0xf4   :  { %s3052_s19 = smov [#allocation23]  }
  0xf5   :  { %2592 = vmatpush3.bf16.msra.mxu1 %v2589_v6  ;;  %s2314_s4 = sshll.u32 %s3052_s19, 4  ;;  %s2315_s4 = int_to_ptr.vmem [resolvable:$true] %s2314_s4 }
  0xf6   :  { %2455 = vmatprep.subr.mxu1 %v3039_v8  ;;  %s2986_s8 = scalar_lea.vmem %s2315_s4, 256  ;;  %p2991_p7 = scmp.lt.s32.totalorder %s2315_s4, %s2315_s4 }
  0xf7   :  { %p2987_p6 = scmp.ne.s32.totalorder %s2315_s4, %s2986_s8  ;;  %p2992_p8 = scmp.lt.s32.totalorder %s2986_s8, %s2986_s8 }
  0xf8   :  { %2453 = vmatmul.mubr.msk.f32.vlgmr.msra.gmra.mrb[0].mxu1 %vm218_vm0, %v3312_v7 }
  0xf9   :  { %2457 = vmatprep.mubr.msk.f32.mxu1 %vm3040_vm1, %v3039_v8  ;;  %p2993_p9 = por %p2992_p8, %p2991_p7 }
  0xfb   :  { %p2994_p10 = pnand %p2993_p9, %p2987_p6 }
 0x1cb   :  { %v2454_v10 = vpop.f32.mrb[0].mxu1 }
 0x1cc   :  { %v291_v11 = vpop.f32.mrb[1].mxu1  ;;  %v3325_v13 = vadd.f32 %v2454_v10, %v2332_v9 }
 0x1cd   :  { %v3322_v12 = vadd.f32 %v2332_v9, %v291_v11 }
 0x1cf   :  { %301 = vrot.lane.b32.xlu0 %v3322_v12, %s3041_s12 }
 0x1d3   :  { %379 = vrot.lane.b32.xlu0 %v3325_v13, %s3041_s12 }
 0x1d7   :  { %555 = vrot.lane.b32.xlu0 %v3325_v13, %s3042_s23 }
 0x1db   :  { %710 = vrot.lane.b32.xlu0 %v3325_v13, %s3043_s14 }
 0x241   :  { %v302_v14 = vpop.permute.xlu0 %301 }
 0x242   :  { %2456 = vmatpush3.xpose.msk.msra.mxu1 %vm303_vm2, %v302_v14 }
 0x243   :  { %2460 = vmatprep.subr.mxu1 %v3039_v8 }
 0x245   :  { %2458 = vmatmul.mubr.msk.f32.vlgmr.msra.gmra.mrb[2].mxu1 %vm303_vm2, %v3322_v12  ;;  %v380_v15 = vpop.permute.xlu0 %379 }
 0x246   :  { %2461 = vmatpush3.xpose.msk.msra.mxu1 %vm303_vm2, %v380_v15  ;;  %2462 = vmatprep.mubr.msk.f32.mxu1 %vm3040_vm1, %v3039_v8 }
 0x247   :  { %2470 = vmatprep.subr.mxu1 %v3039_v8 }
 0x249   :  { %2463 = vmatmul.mubr.msk.f32.vlgmr.msra.gmra.mrb[4].mxu1 %vm303_vm2, %v3325_v13  ;;  %v556_v16 = vpop.permute.xlu0 %555 }
 0x24a   :  { %2471 = vmatpush3.msra.mxu1 %v556_v16  ;;  %2472 = vmatprep.mubr.msk.f32.mxu1 %vm3040_vm1, %v3039_v8 }
 0x24b   :  { %2480 = vmatprep.subr.mxu1 %v3039_v8 }
 0x24d   :  { %v711_v23 = vpop.permute.xlu0 %710 }
 0x318   :  { %v374_v17 = vpop.f32.mrb[2].mxu1 }
 0x319   :  { %v2459_v18 = vpop.f32.mrb[3].mxu1  ;;  %v455_v19 = vsel %vm303_vm2, %v374_v17, -inf }
 0x31a   :  { %456 = vmax.xlane.f32.xlu0 %v455_v19  ;;  %v631_v18 = vld [vmem:[#allocation8] sm:$0xff] }
 0x31c   :  { %v451_v20 = vpop.f32.mrb[4].mxu1 }
 0x31d   :  { %v2464_v21 = vpop.f32.mrb[5].mxu1  ;;  %v458_v22 = vsel %vm303_vm2, %v451_v20, -inf }
 0x31e   :  { %459 = vmax.xlane.f32.xlu1 %v458_v22 }
 0x330   :  { %479 = vrot.lane.b32.xlu0 %v3322_v12, %s3042_s23 }
 0x334   :  { %632 = vrot.lane.b32.xlu0 %v3322_v12, %s3043_s14 }
 0x3a7   :  { %v457_v24 = vpop.xlane.xlu0 %456 }
 0x3a8   :  { %v461_v31 = vsub.f32 %v374_v17, %v457_v24  ;;  %v965_v17 = vld [vmem:[#allocation8 + $0x8] sm:$0xff] }
 0x3aa   :  { %v463_v32 = vmul.f32 1.442695, %v461_v31 }
 0x3ab   :  { %v460_v25 = vpop.xlane.xlu1 %459  ;;  %v480_v26 = vpop.permute.xlu0 %479 }
 0x3ac   :  { %v462_v27 = vsub.f32 %v451_v20, %v460_v25  ;;  %2466 = vmatpush3.msra.mxu0 %v480_v26 }
 0x3ad   :  { %2475 = vmatprep.subr.mxu0 %v3039_v8 }
 0x3ae   :  { %v465_v28 = vmul.f32 1.442695, %v462_v27 }
 0x3af   :  { %v633_v43 = vpop.permute.xlu0 %632 }
 0x3b0   :  { %2652 = vpow2.f32 %v465_v28 }
 0x3b1   :  { %2654 = vpow2.f32 %v463_v32 }
 0x3ba   :  { %v2653_v29 = vpop.eup %2652 }
 0x3bb   :  { %v470_v30 = vsel %vm303_vm2, %v2653_v29, 0.0  ;;  %v2655_v33 = vpop.eup %2654 }
 0x3bc   :  { %471 = vadd.xlane.f32.xlu1 %v470_v30  ;;  %v467_v34 = vsel %vm303_vm2, %v2655_v33, 0.0 }
 0x3cd   :  { %712 = vrot.lane.b32.xlu1 %v3325_v13, %s3044_s28 }
 0x3f1   :  { %468 = vadd.xlane.f32.xlu1 %v467_v34 }
 0x402   :  { %634 = vrot.lane.b32.xlu1 %v3322_v12, %s3044_s28 }
 0x406   :  { %1130 = vrot.lane.b32.xlu1 %v3322_v12, %s3045_s15 }
 0x449   :  { %v472_v35 = vpop.xlane.xlu1 %471 }
 0x44a   :  { %2656 = vrcp.f32 %v472_v35 }
 0x44d   :  { %v713_v38 = vpop.permute.xlu1 %712 }
 0x454   :  { %v2657_v36 = vpop.eup %2656 }
 0x455   :  { %v478_v37 = vmul.f32 %v2657_v36, %v2653_v29 }
 0x457   :  { %2473 = vmatmul.mubr.msk.f32.vlgmr.msra.gmra.mrb[6].mxu1 %vm303_vm2, %v478_v37 }
 0x458   :  { %2481 = vmatpush3.xpose.msk.msra.mxu1 %vm303_vm2, %v713_v38  ;;  %2482 = vmatprep.mubr.msk.f32.mxu1 %vm3040_vm1, %v3039_v8 }
 0x459   :  { %2490 = vmatprep.subr.mxu1 %v3039_v8 }
 0x45b   :  { %2483 = vmatmul.mubr.msk.f32.vlgmr.msra.gmra.mrb[8].mxu1 %vm303_vm2, %v711_v23 }
 0x45c   :  { %2492 = vmatprep.mubr.msk.f32.mxu1 %vm3040_vm1, %v3039_v8 }
 0x47e   :  { %v469_v39 = vpop.xlane.xlu1 %468 }
 0x47f   :  { %2658 = vrcp.f32 %v469_v39 }
 0x482   :  { %v635_v42 = vpop.permute.xlu1 %634 }
 0x486   :  { %v1131_v4 = vpop.permute.xlu1 %1130 }
 0x489   :  { %v2659_v40 = vpop.eup %2658 }
 0x48a   :  { %v477_v41 = vmul.f32 %v2659_v40, %v2655_v33  ;;  %v1461_v40 = vld [vmem:[#allocation8 + $0x10] sm:$0xff] }
 0x48c   :  { %2468 = vmatmul.mubr.msk.f32.vlgmr.msra.gmra.mrb[0].mxu0 %vm303_vm2, %v477_v41 }
 0x48d   :  { %2476 = vmatpush3.xpose.msk.msra.mxu0 %vm303_vm2, %v635_v42  ;;  %2477 = vmatprep.mubr.msk.f32.mxu0 %vm3040_vm1, %v3039_v8 }
 0x48e   :  { %2485 = vmatprep.subr.mxu0 %v3039_v8 }
 0x490   :  { %2478 = vmatmul.mubr.msk.f32.vlgmr.msra.gmra.mrb[2].mxu0 %vm303_vm2, %v633_v43 }
 0x491   :  { %2487 = vmatprep.mubr.msk.f32.mxu0 %vm3040_vm1, %v3039_v8 }
 0x52a   :  { %v3370_v44 = vpop.f32.mrb[6].mxu1 }
 0x52b   :  { %v2474_v45 = vpop.f32.mrb[7].mxu1 }
 0x52e   :  { %v784_v46 = vpop.f32.mrb[8].mxu1 }
 0x52f   :  { %v2484_v47 = vpop.f32.mrb[9].mxu1  ;;  %v791_v48 = vsel %vm303_vm2, %v784_v46, -inf }
 0x530   :  { %792 = vmax.xlane.f32.xlu0 %v791_v48 }
 0x546   :  { %888 = vrot.lane.b32.xlu0 %v3325_v13, %s3046_s9 }
 0x54a   :  { %1128 = vrot.lane.b32.xlu0 %v3322_v12, %s3047_s30 }
 0x54e   :  { %1208 = vrot.lane.b32.xlu0 %v3325_v13, %s3045_s15 }
 0x55f   :  { %v3377_v49 = vpop.f32.mrb[0].mxu0 }
 0x560   :  { %v2469_v50 = vpop.f32.mrb[1].mxu0 }
 0x563   :  { %v706_v51 = vpop.f32.mrb[2].mxu0 }
 0x564   :  { %v2479_v52 = vpop.f32.mrb[3].mxu0  ;;  %v788_v53 = vsel %vm303_vm2, %v706_v51, -inf }
 0x56d   :  { %789 = vmax.xlane.f32.xlu0 %v788_v53 }
 0x583   :  { %812 = vrot.lane.b32.xlu0 %v3322_v12, %s3046_s9 }
 0x587   :  { %1308 = vrot.lane.b32.xlu0 %v3322_v12, %s3048_s16 }
 0x58b   :  { %1547 = vrot.lane.b32.xlu0 %v3322_v12, %s3049_s26 }
 0x58f   :  { %1625 = vrot.lane.b32.xlu0 %v3325_v13, %s3049_s26 }
 0x593   :  { %1545 = vrot.lane.b32.xlu0 %v3322_v12, %s3050_s0 }
 0x597   :  { %1623 = vrot.lane.b32.xlu0 %v3325_v13, %s3050_s0 }
 0x5bd   :  { %v793_v54 = vpop.xlane.xlu0 %792 }
 0x5be   :  { %v795_v55 = vsub.f32 %v784_v46, %v793_v54 }
 0x5c0   :  { %v798_v56 = vmul.f32 1.442695, %v795_v55 }
 0x5c1   :  { %v889_v57 = vpop.permute.xlu0 %888 }
 0x5c2   :  { %2660 = vpow2.f32 %v798_v56  ;;  %2491 = vmatpush3.msra.mxu1 %v889_v57 }
 0x5c3   :  { %2505 = vmatprep.subr.mxu1 %v3039_v8 }
 0x5c5   :  { %v1129_v60 = vpop.permute.xlu0 %1128 }
 0x5c9   :  { %v1209_v61 = vpop.permute.xlu0 %1208 }
 0x5cc   :  { %v2661_v58 = vpop.eup %2660 }
 0x5cd   :  { %v803_v59 = vsel %vm303_vm2, %v2661_v58, 0.0 }
 0x5ce   :  { %804 = vadd.xlane.f32.xlu1 %v803_v59 }
 0x5df   :  { %1206 = vrot.lane.b32.xlu1 %v3325_v13, %s3047_s30 }
 0x5fa   :  { %v790_v62 = vpop.xlane.xlu0 %789 }
 0x5fb   :  { %v794_v63 = vsub.f32 %v706_v51, %v790_v62 }
 0x5fd   :  { %v796_v0 = vmul.f32 1.442695, %v794_v63 }
 0x5fe   :  { %v813_v1 = vpop.permute.xlu0 %812 }
 0x5ff   :  { %2662 = vpow2.f32 %v796_v0  ;;  %2486 = vmatpush3.msra.mxu0 %v813_v1 }
 0x600   :  { %2495 = vmatprep.subr.mxu0 %v965_v17 }
 0x602   :  { %v1309_v29 = vpop.permute.xlu0 %1308 }
 0x609   :  { %v2663_v2 = vpop.eup %2662 }
 0x60a   :  { %v800_v3 = vsel %vm303_vm2, %v2663_v2, 0.0 }
 0x60b   :  { %801 = vadd.xlane.f32.xlu1 %v800_v3 }
 0x65b   :  { %v805_v6 = vpop.xlane.xlu1 %804 }
 0x65c   :  { %2664 = vrcp.f32 %v805_v6 }
 0x65f   :  { %v1207_v11 = vpop.permute.xlu1 %1206 }
 0x666   :  { %v2665_v9 = vpop.eup %2664 }
 0x667   :  { %v811_v10 = vmul.f32 %v2665_v9, %v2661_v58 }
 0x669   :  { %2493 = vmatmul.mubr.msk.f32.vlgmr.msra.gmra.mrb[10].mxu1 %vm303_vm2, %v811_v10 }
 0x66a   :  { %2506 = vmatpush3.xpose.msk.msra.mxu1 %vm303_vm2, %v1131_v4  ;;  %2507 = vmatprep.mubr.msk.f32.mxu1 %vm3040_vm1, %v3039_v8 }
 0x66b   :  { %2510 = vmatprep.subr.mxu1 %v3039_v8 }
 0x66d   :  { %2508 = vmatmul.mubr.msk.f32.vlgmr.msra.gmra.mrb[12].mxu1 %vm303_vm2, %v1129_v60 }
 0x66e   :  { %2511 = vmatpush3.xpose.msk.msra.mxu1 %vm303_vm2, %v1209_v61  ;;  %2512 = vmatprep.mubr.msk.f32.mxu1 %vm3040_vm1, %v3039_v8 }
 0x66f   :  { %2520 = vmatprep.subr.mxu1 %v3039_v8 }
 0x671   :  { %2513 = vmatmul.mubr.msk.f32.vlgmr.msra.gmra.mrb[14].mxu1 %vm303_vm2, %v1207_v11 }
 0x672   :  { %2522 = vmatprep.mubr.msk.f32.mxu1 %vm3040_vm1, %v3039_v8 }
 0x698   :  { %v802_v14 = vpop.xlane.xlu1 %801 }
 0x699   :  { %2666 = vrcp.f32 %v802_v14 }
 0x6a3   :  { %v2667_v15 = vpop.eup %2666 }
 0x6a4   :  { %v810_v16 = vmul.f32 %v2667_v15, %v2663_v2 }
 0x6a6   :  { %2488 = vmatmul.mubr.msk.f32.vlgmr.msra.gmra.mrb[4].mxu0 %vm303_vm2, %v810_v16 }
 0x6a7   :  { %2496 = vmatpush3.msra.mxu0 %v965_v17 }
 0x6a8   :  { %2500 = vmatprep.subr.mxu0 %v631_v18 }
 0x73c   :  { %v960_v19 = vpop.f32.mrb[10].mxu1 }
 0x73d   :  { %v2494_v20 = vpop.f32.mrb[11].mxu1 }
 0x740   :  { %v1202_v21 = vpop.f32.mrb[12].mxu1 }
 0x741   :  { %v2509_v22 = vpop.f32.mrb[13].mxu1  ;;  %v1284_v23 = vsel %vm303_vm2, %v1202_v21, -inf }
 0x742   :  { %1285 = vmax.xlane.f32.xlu1 %v1284_v23 }
 0x744   :  { %v1280_v24 = vpop.f32.mrb[14].mxu1 }
 0x745   :  { %v2514_v25 = vpop.f32.mrb[15].mxu1  ;;  %v1287_v26 = vsel %vm303_vm2, %v1280_v24, -inf }
 0x746   :  { %1288 = vmax.xlane.f32.xlu1 %v1287_v26 }
 0x779   :  { %v884_v27 = vpop.f32.mrb[4].mxu0 }
 0x77a   :  { %v2489_v28 = vpop.f32.mrb[5].mxu0  ;;  %2497 = vmatprep.mubr.msk.f32.mxu0 %vm303_vm2, %v884_v27 }
 0x77b   :  { %2498 = vmatmul.mubr.msk.f32.vlgmr.msra.gmra.mrb[6].mxu0 %vm303_vm2, %v960_v19 }
 0x77c   :  { %2502 = vmatprep.mubr.msk.f32.mxu0 %vm303_vm2, %v3377_v49  ;;  %2501 = vmatpush3.msra.mxu0 %v631_v18 }
 0x77d   :  { %2515 = vmatprep.subr.mxu0 %v3039_v8 }
 0x783   :  { %2503 = vmatmul.mubr.msk.f32.vlgmr.msra.gmra.mrb[6].mxu0 %vm303_vm2, %v3370_v44  ;;  %v1548_v44 = vpop.permute.xlu0 %1547 }
 0x784   :  { %2516 = vmatpush3.msra.mxu0 %v1309_v29  ;;  %2517 = vmatprep.mubr.msk.f32.mxu0 %vm3040_vm1, %v3039_v8 }
 0x785   :  { %2525 = vmatprep.subr.mxu0 %v1461_v40 }
 0x787   :  { %v1626_v48 = vpop.permute.xlu0 %1625 }
 0x78b   :  { %v1546_v50 = vpop.permute.xlu0 %1545 }
 0x78f   :  { %v1624_v55 = vpop.permute.xlu0 %1623 }
 0x7cf   :  { %v1286_v30 = vpop.xlane.xlu1 %1285 }
 0x7d0   :  { %v1290_v31 = vsub.f32 %v1202_v21, %v1286_v30 }
 0x7d2   :  { %v1292_v32 = vmul.f32 1.442695, %v1290_v31 }
 0x7d3   :  { %v1289_v33 = vpop.xlane.xlu1 %1288 }
 0x7d4   :  { %2668 = vpow2.f32 %v1292_v32  ;;  %v1291_v34 = vsub.f32 %v1280_v24, %v1289_v33 }
 0x7d6   :  { %v1294_v35 = vmul.f32 1.442695, %v1291_v34 }
 0x7d8   :  { %2670 = vpow2.f32 %v1294_v35 }
 0x7de   :  { %v2669_v36 = vpop.eup %2668 }
 0x7df   :  { %v1296_v37 = vsel %vm303_vm2, %v2669_v36, 0.0 }
 0x7e0   :  { %1297 = vadd.xlane.f32.xlu1 %v1296_v37 }
 0x7e2   :  { %v2671_v38 = vpop.eup %2670 }
 0x7e3   :  { %v1299_v39 = vsel %vm303_vm2, %v2671_v38, 0.0 }
 0x7e4   :  { %1300 = vadd.xlane.f32.xlu1 %v1299_v39 }
 0x7f5   :  { %1384 = vrot.lane.b32.xlu1 %v3325_v13, %s3048_s16 }
 0x86d   :  { %v1298_v41 = vpop.xlane.xlu1 %1297 }
 0x86e   :  { %2672 = vrcp.f32 %v1298_v41  ;;  %v2019_v41 = vld [vmem:[#allocation14 + $0x8] sm:$0xff] }
 0x871   :  { %v1301_v42 = vpop.xlane.xlu1 %1300 }
 0x872   :  { %2674 = vrcp.f32 %v1301_v42 }
 0x875   :  { %v1385_v43 = vpop.permute.xlu1 %1384 }
 0x876   :  { %2521 = vmatpush3.msra.mxu1 %v1385_v43  ;;  %v2020_v43 = vld [vmem:[#allocation14 + $0x10] sm:$0xff] }
 0x877   :  { %2530 = vmatprep.subr.mxu1 %v3039_v8 }
 0x878   :  { %v2673_v45 = vpop.eup %2672 }
 0x879   :  { %v1306_v46 = vmul.f32 %v2673_v45, %v2669_v36 }
 0x87b   :  { %2518 = vmatmul.mubr.msk.f32.vlgmr.msra.gmra.mrb[8].mxu0 %vm303_vm2, %v1306_v46 }
 0x87c   :  { %v2675_v47 = vpop.eup %2674  ;;  %2526 = vmatpush3.msra.mxu0 %v1461_v40 }
 0x87d   :  { %v1307_v49 = vmul.f32 %v2675_v47, %v2671_v38  ;;  %2535 = vmatprep.subr.mxu0 %v3039_v8 }
 0x87f   :  { %2523 = vmatmul.mubr.msk.f32.vlgmr.msra.gmra.mrb[16].mxu1 %vm303_vm2, %v1307_v49 }
 0x880   :  { %2531 = vmatpush3.xpose.msk.msra.mxu1 %vm303_vm2, %v1548_v44  ;;  %2532 = vmatprep.mubr.msk.f32.mxu1 %vm3040_vm1, %v3039_v8  ;;  %v2021_v44 = vld [vmem:[#allocation14 + $0x18] sm:$0xff] }
 0x881   :  { %2540 = vmatprep.subr.mxu1 %v3039_v8  ;;  %v2597_v45 = vpack.c.bf16 %v2021_v44, %v2020_v43 }
 0x883   :  { %2533 = vmatmul.mubr.msk.f32.vlgmr.msra.gmra.mrb[18].mxu1 %vm303_vm2, %v1546_v50 }
 0x884   :  { %2542 = vmatprep.mubr.msk.f32.mxu1 %vm3040_vm1, %v3039_v8 }
 0x94e   :  { %v1380_v51 = vpop.f32.mrb[8].mxu0 }
 0x94f   :  { %v2519_v52 = vpop.f32.mrb[9].mxu0  ;;  %2527 = vmatprep.mubr.msk.f32.mxu0 %vm303_vm2, %v1380_v51 }
 0x952   :  { %v1456_v53 = vpop.f32.mrb[16].mxu1 }
 0x953   :  { %v2524_v54 = vpop.f32.mrb[17].mxu1  ;;  %2528 = vmatmul.mubr.msk.f32.vlgmr.msra.gmra.mrb[6].mxu0 %vm303_vm2, %v1456_v53  ;;  %v2368_v53 = vld [vmem:[#allocation11] ss:$0 sm:$0xff] }
 0x954   :  { %2536 = vmatpush3.xpose.msk.msra.mxu0 %vm303_vm2, %v1626_v48  ;;  %2537 = vmatprep.mubr.msk.f32.mxu0 %vm3040_vm1, %v3039_v8 }
 0x955   :  { %2545 = vmatprep.subr.mxu0 %v3039_v8 }
 0x956   :  { %v1619_v56 = vpop.f32.mrb[18].mxu1 }
 0x957   :  { %v2534_v57 = vpop.f32.mrb[19].mxu1  ;;  %2538 = vmatmul.mubr.msk.f32.vlgmr.msra.gmra.mrb[10].mxu0 %vm303_vm2, %v1624_v55  ;;  %v1701_v58 = vsel %vm303_vm2, %v1619_v56, -inf }
 0x958   :  { %1702 = vmax.xlane.f32.xlu1 %v1701_v58  ;;  %2547 = vmatprep.mubr.msk.f32.mxu0 %vm3040_vm1, %v3039_v8  ;;  %v2369_v57 = vld [vmem:[#allocation13] ss:$0 sm:$0xff] }
 0x9e5   :  { %v1703_v59 = vpop.xlane.xlu1 %1702 }
 0x9e6   :  { %v1707_v60 = vsub.f32 %v1619_v56, %v1703_v59 }
 0x9e8   :  { %v1709_v61 = vmul.f32 1.442695, %v1707_v60 }
 0x9ea   :  { %2676 = vpow2.f32 %v1709_v61 }
 0x9f4   :  { %v2677_v1 = vpop.eup %2676 }
 0x9f5   :  { %v1713_v2 = vsel %vm303_vm2, %v2677_v1, 0.0 }
 0xa2a   :  { %v1697_v62 = vpop.f32.mrb[10].mxu0 }
 0xa2b   :  { %v2539_v63 = vpop.f32.mrb[11].mxu0  ;;  %v1704_v0 = vsel %vm303_vm2, %v1697_v62, -inf }
 0xa2c   :  { %1705 = vmax.xlane.f32.xlu0 %v1704_v0  ;;  %v2165_v63 = vld [vmem:[#allocation17 + $0x8] sm:$0xff] }
 0xa30   :  { %1714 = vadd.xlane.f32.xlu0 %v1713_v2  ;;  %v2167_v2 = vld [vmem:[#allocation17 + $0x18] sm:$0xff] }
 0xa46   :  { %1725 = vrot.lane.b32.xlu0 %v3322_v12, %s3051_s1  ;;  %v1878_v12 = vld [vmem:[#allocation8 + $0x18] sm:$0xff] }
 0xab9   :  { %v1706_v3 = vpop.xlane.xlu0 %1705 }
 0xaba   :  { %v1708_v4 = vsub.f32 %v1697_v62, %v1706_v3  ;;  %v2164_v62 = vld [vmem:[#allocation17] sm:$0xff] }
 0xabb   :  { %v2601_v0 = vpack.c.bf16 %v2165_v63, %v2164_v62 }
 0xabc   :  { %v1711_v6 = vmul.f32 1.442695, %v1708_v4  ;;  %v2168_v4 = vld [vmem:[#allocation17 + $0x20] sm:$0xff] }
 0xabd   :  { %v1715_v8 = vpop.xlane.xlu0 %1714 }
 0xabe   :  { %2678 = vpow2.f32 %v1711_v6  ;;  %v2169_v6 = vld [vmem:[#allocation17 + $0x28] sm:$0xff] }
 0xabf   :  { %2680 = vrcp.f32 %v1715_v8  ;;  %v2609_v8 = vpack.c.bf16 %v2169_v6, %v2168_v4 }
 0xac1   :  { %v1726_v9 = vpop.permute.xlu0 %1725 }
 0xac2   :  { %2541 = vmatpush3.msra.mxu1 %v1726_v9  ;;  %v2170_v9 = vld [vmem:[#allocation17 + $0x30] sm:$0xff] }
 0xac8   :  { %v2679_v10 = vpop.eup %2678 }
 0xac9   :  { %v2681_v11 = vpop.eup %2680  ;;  %v1716_v14 = vsel %vm303_vm2, %v2679_v10, 0.0 }
 0xaca   :  { %v1723_v15 = vmul.f32 %v2681_v11, %v2677_v1  ;;  %1717 = vadd.xlane.f32.xlu1 %v1716_v14  ;;  %v2166_v1 = vld [vmem:[#allocation17 + $0x10] sm:$0xff]  ;;  %v2370_v14 = vld [vmem:[#allocation16] ss:$0 sm:$0xff] }
 0xacb   :  { %v2605_v3 = vpack.c.bf16 %v2167_v2, %v2166_v1 }
 0xacc   :  { %2543 = vmatmul.mubr.msk.f32.vlgmr.msra.gmra.mrb[20].mxu1 %vm303_vm2, %v1723_v15 }
 0xadb   :  { %1801 = vrot.lane.b32.xlu1 %v3325_v13, %s3051_s1  ;;  %v2367_v13 = vld [vmem:[#allocation10] ss:$0 sm:$0xff] }
 0xb57   :  { %v1718_v16 = vpop.xlane.xlu1 %1717 }
 0xb58   :  { %2682 = vrcp.f32 %v1718_v16 }
 0xb5b   :  { %v1802_v17 = vpop.permute.xlu1 %1801 }
 0xb5c   :  { %2546 = vmatpush3.msra.mxu0 %v1802_v17 }
 0xb5d   :  { %2550 = vmatprep.subr.mxu0 %v1878_v12 }
 0xb62   :  { %v2683_v18 = vpop.eup %2682 }
 0xb63   :  { %v1724_v19 = vmul.f32 %v2683_v18, %v2679_v10  ;;  %v2171_v10 = vld [vmem:[#allocation17 + $0x38] sm:$0xff] }
 0xb64   :  { %v2613_v11 = vpack.c.bf16 %v2171_v10, %v2170_v9 }
 0xb65   :  { %2548 = vmatmul.mubr.msk.f32.vlgmr.msra.gmra.mrb[12].mxu0 %vm303_vm2, %v1724_v19 }
 0xb66   :  { %2551 = vmatpush3.msra.mxu0 %v1878_v12 }
 0xb67   :  { %2602 = vmatprep.subr.bf16.mxu0 %v2601_v0 }
 0xb9f   :  { %v1797_v20 = vpop.f32.mrb[20].mxu1 }
 0xba0   :  { %v2544_v21 = vpop.f32.mrb[21].mxu1  ;;  %2552 = vmatprep.mubr.msk.f32.mxu0 %vm303_vm2, %v1797_v20 }
 0xc38   :  { %v1873_v22 = vpop.f32.mrb[12].mxu0 }
 0xc39   :  { %v2549_v23 = vpop.f32.mrb[13].mxu0  ;;  %2553 = vmatmul.mubr.msk.f32.vlgmr.msra.gmra.mrb[6].mxu0 %vm303_vm2, %v1873_v22 }
 0xc3a   :  { %2604 = vmatpush3.bf16.msra.mxu0 %v2601_v0 }
 0xc3b   :  { %2606 = vmatprep.subr.bf16.mxu0 %v2605_v3 }
 0xc3e   :  { %2608 = vmatpush3.bf16.msra.mxu0 %v2605_v3  ;;  %v2373_v3 = vld [vmem:[#allocation19] ss:$0 sm:$0xff] }
 0xc3f   :  { %2610 = vmatprep.subr.bf16.mxu0 %v2609_v8 }
 0xc42   :  { %2612 = vmatpush3.bf16.msra.mxu0 %v2609_v8 }
 0xc43   :  { %2614 = vmatprep.subr.bf16.mxu0 %v2613_v11 }
 0xc46   :  { %2616 = vmatpush3.bf16.msra.mxu0 %v2613_v11 }
 0xd0c   :  { %v2554_v24 = vpop.f32.mrb[6].mxu0 }
 0xd0d   :  { %v1970_v25 = vadd.f32 %v2554_v24, %v2367_v13  ;;  %v1951_v26 = vpop.f32.mrb[7].mxu0 }
 0xd0e   :  { %v1969_v27 = vadd.f32 %v2367_v13, %v1951_v26 }
 0xd0f   :  { %v1972_v28 = vadd.f32 %v1970_v25, %v3312_v7 }
 0xd10   :  { %v1971_v29 = vadd.f32 %v1969_v27, %v3308_v5  ;;  %v2018_v5 = vld [vmem:[#allocation14] sm:$0xff] }
 0xd11   :  { %v1978_v30 = vsel %vm218_vm0, %v1972_v28, 0.0  ;;  %v2593_v42 = vpack.c.bf16 %v2019_v41, %v2018_v5 }
 0xd12   :  { %1979 = vadd.xlane.f32.xlu0 %v1978_v30  ;;  %v1975_v31 = vsel %vm218_vm0, %v1971_v29, 0.0 }
 0xd13   :  { %1976 = vadd.xlane.f32.xlu1 %v1975_v31  ;;  %2594 = vmatprep.subr.bf16.mxu1 %v2593_v42 }
 0xd14   :  { %2596 = vmatpush3.bf16.msra.mxu1 %v2593_v42 }
 0xd15   :  { %2598 = vmatprep.subr.bf16.mxu1 %v2597_v45 }
 0xd18   :  { %2600 = vmatpush3.bf16.msra.mxu1 %v2597_v45 }
 0xd9f   :  { %v1980_v32 = vpop.xlane.xlu0 %1979 }
 0xda0   :  { %v1983_v33 = vmul.f32 0.03125, %v1980_v32  ;;  %v1977_v34 = vpop.xlane.xlu1 %1976 }
 0xda1   :  { %v1982_v35 = vmul.f32 0.03125, %v1977_v34 }
 0xda2   :  { %v1985_v36 = vsub.f32 %v1972_v28, %v1983_v33 }
 0xda3   :  { %v1984_v37 = vsub.f32 %v1971_v29, %v1982_v35 }
 0xda4   :  { %v1987_v38 = vmul.f32 %v1985_v36, %v1985_v36 }
 0xda5   :  { %v1986_v39 = vmul.f32 %v1984_v37, %v1984_v37 }
 0xda6   :  { %v1991_v40 = vsel %vm218_vm0, %v1987_v38, 0.0 }
 0xda7   :  { %1992 = vadd.xlane.f32.xlu1 %v1991_v40  ;;  %v1988_v7 = vsel %vm218_vm0, %v1986_v39, 0.0 }
 0xda8   :  { %1989 = vadd.xlane.f32.xlu0 %v1988_v7 }
 0xe34   :  { %v1993_v46 = vpop.xlane.xlu1 %1992 }
 0xe35   :  { %v1995_v47 = vmul.f32 0.03125, %v1993_v46  ;;  %v1990_v48 = vpop.xlane.xlu0 %1989 }
 0xe36   :  { %v1994_v49 = vmul.f32 0.03125, %v1990_v48 }
 0xe37   :  { %v1997_v50 = vadd.f32 1e-05, %v1995_v47 }
 0xe38   :  { %v1996_v51 = vadd.f32 1e-05, %v1994_v49 }
 0xe39   :  { %2684 = vrsqrt.f32 %v1997_v50 }
 0xe3a   :  { %2686 = vrsqrt.f32 %v1996_v51 }
 0xe43   :  { %v2685_v52 = vpop.eup %2684 }
 0xe44   :  { %v2687_v54 = vpop.eup %2686  ;;  %v2001_v55 = vmul.f32 %v2685_v52, %v1985_v36 }
 0xe45   :  { %v2000_v56 = vmul.f32 %v2687_v54, %v1984_v37 }
 0xe46   :  { %v2009_v58 = vmul.f32 %v2368_v53, %v2001_v55 }
 0xe47   :  { %v2008_v59 = vmul.f32 %v2368_v53, %v2000_v56 }
 0xe48   :  { %v3458_v61 = vadd.f32 %v2369_v57, %v2009_v58 }
 0xe49   :  { %v3456_v60 = vadd.f32 %v2369_v57, %v2008_v59 }
 0xe4b   :  { %2563 = vmatprep.mubr.msk.f32.mxu1 %vm218_vm0, %v3456_v60 }
 0xe4c   :  { %2564 = vmatmul.mubr.msk.f32.vlgmr.msra.gmra.mrb[22].mxu1 %vm218_vm0, %v3458_v61 }
 0xf1f   :  { %v2565_v15 = vpop.f32.mrb[22].mxu1 }
 0xf20   :  { %v2107_v16 = vadd.f32 %v2565_v15, %v2370_v14  ;;  %v2101_v12 = vpop.f32.mrb[23].mxu1 }
 0xf21   :  { %v2102_v17 = vadd.f32 %v2370_v14, %v2101_v12 }
 0xf22   :  { %v2113_v18 = vmul.f32 0.70710677, %v2107_v16  ;;  %v2111_v0 = vmul.f32 0.5, %v2107_v16 }
 0xf23   :  { %v2112_v19 = vmul.f32 0.70710677, %v2102_v17  ;;  %v2110_v62 = vmul.f32 0.5, %v2102_v17 }
 0xf24   :  { %v2115_v20 = vand.u32 2147483647, %v2113_v18  ;;  %vm2155_vm3 = vcmp.ge.f32.partialorder %v2113_v18, 0.0 }
 0xf25   :  { %v2114_v21 = vand.u32 2147483647, %v2112_v19  ;;  %vm2154_vm4 = vcmp.ge.f32.partialorder %v2112_v19, 0.0 }
 0xf26   :  { %v2117_v22 = vmul.f32 0.3275911, %v2115_v20  ;;  %v2143_v25 = vsub.f32 0.0, %v2115_v20 }
 0xf27   :  { %v2116_v23 = vmul.f32 0.3275911, %v2114_v21  ;;  %v2142_v26 = vsub.f32 0.0, %v2114_v21 }
 0xf28   :  { %v2119_v13 = vadd.f32 1.0, %v2117_v22  ;;  %v2145_v28 = vmul.f32 %v2143_v25, %v2115_v20 }
 0xf29   :  { %v2118_v24 = vadd.f32 1.0, %v2116_v23  ;;  %v2144_v31 = vmul.f32 %v2142_v26, %v2114_v21 }
 0xf2a   :  { %2688 = vrcp.f32 %v2119_v13  ;;  %v2148_v34 = vmul.f32 1.442695, %v2145_v28 }
 0xf2b   :  { %2690 = vrcp.f32 %v2118_v24  ;;  %v2146_v37 = vmul.f32 1.442695, %v2144_v31 }
 0xf2c   :  { %2692 = vpow2.f32 %v2148_v34 }
 0xf2d   :  { %2694 = vpow2.f32 %v2146_v37 }
 0xf34   :  { %v2689_v27 = vpop.eup %2688 }
 0xf35   :  { %v2691_v29 = vpop.eup %2690  ;;  %v2125_v30 = vmul.f32 1.0614054, %v2689_v27 }
 0xf36   :  { %v2124_v32 = vmul.f32 1.0614054, %v2691_v29  ;;  %v2693_v48 = vpop.eup %2692 }
 0xf37   :  { %v2127_v33 = vadd.f32 -1.4531521, %v2125_v30  ;;  %v2695_v50 = vpop.eup %2694 }
 0xf38   :  { %v2126_v35 = vadd.f32 -1.4531521, %v2124_v32 }
 0xf39   :  { %v2129_v36 = vmul.f32 %v2689_v27, %v2127_v33  ;;  %v2377_v33 = vld [vmem:[#allocation22] ss:$0 sm:$0xff] }
 0xf3a   :  { %v2128_v38 = vmul.f32 %v2691_v29, %v2126_v35 }
 0xf3b   :  { %v2131_v39 = vadd.f32 1.4214138, %v2129_v36 }
 0xf3c   :  { %v2130_v40 = vadd.f32 1.4214138, %v2128_v38 }
 0xf3d   :  { %v2133_v7 = vmul.f32 %v2689_v27, %v2131_v39 }
 0xf3e   :  { %v2132_v5 = vmul.f32 %v2691_v29, %v2130_v40 }
 0xf3f   :  { %v2135_v41 = vadd.f32 -0.28449672, %v2133_v7 }
 0xf40   :  { %v2134_v42 = vadd.f32 -0.28449672, %v2132_v5 }
 0xf41   :  { %v2137_v43 = vmul.f32 %v2689_v27, %v2135_v41 }
 0xf42   :  { %v2136_v44 = vmul.f32 %v2691_v29, %v2134_v42 }
 0xf43   :  { %v2139_v45 = vadd.f32 0.2548296, %v2137_v43 }
 0xf44   :  { %v2138_v46 = vadd.f32 0.2548296, %v2136_v44 }
 0xf45   :  { %v2141_v47 = vmul.f32 %v2689_v27, %v2139_v45 }
 0xf46   :  { %v2140_v49 = vmul.f32 %v2691_v29, %v2138_v46  ;;  %v2376_v29 = vld [vmem:[#allocation20] ss:$0 sm:$0xff] }
 0xf47   :  { %v2151_v51 = vmul.f32 %v2693_v48, %v2141_v47 }
 0xf48   :  { %v2150_v52 = vmul.f32 %v2695_v50, %v2140_v49 }
 0xf49   :  { %v2153_v53 = vsub.f32 1.0, %v2151_v51 }
 0xf4a   :  { %v2152_v54 = vsub.f32 1.0, %v2150_v52 }
 0xf4b   :  { %v2157_v55 = vsub.f32 0.0, %v2153_v53 }
 0xf4c   :  { %v2156_v56 = vsub.f32 0.0, %v2152_v54 }
 0xf4d   :  { %v2159_v57 = vsel %vm2155_vm3, %v2153_v53, %v2157_v55 }
 0xf4e   :  { %v2161_v58 = vadd.f32 1.0, %v2159_v57  ;;  %v2158_v59 = vsel %vm2154_vm4, %v2152_v54, %v2156_v56 }
 0xf4f   :  { %v2160_v63 = vadd.f32 1.0, %v2158_v59 }
 0xf50   :  { %v2163_v2 = vmul.f32 %v2161_v58, %v2111_v0 }
 0xf51   :  { %v2162_v1 = vmul.f32 %v2160_v63, %v2110_v62 }
 0xf53   :  { %2582 = vmatprep.mubr.msk.f32.mxu0 %vm2179_vm5, %v2162_v1 }
 0xf54   :  { %2583 = vmatmul.mubr.msk.f32.vlgmr.msra.gmra.mrb[14].mxu0 %vm2179_vm5, %v2163_v2 }
0x1027   :  { %v2584_v4 = vpop.f32.mrb[14].mxu0 }
0x1028   :  { %v2258_v6 = vadd.f32 %v2584_v4, %v2373_v3  ;;  %v2252_v8 = vpop.f32.mrb[15].mxu0 }
0x1029   :  { %v2253_v9 = vadd.f32 %v2373_v3, %v2252_v8 }
0x102a   :  { %v2262_v10 = vadd.f32 %v2258_v6, %v3458_v61 }
0x102b   :  { %v2261_v11 = vadd.f32 %v2253_v9, %v3456_v60 }
0x102c   :  { %v2268_v14 = vsel %vm218_vm0, %v2262_v10, 0.0 }
0x102d   :  { %2269 = vadd.xlane.f32.xlu1 %v2268_v14  ;;  %v2265_v15 = vsel %vm218_vm0, %v2261_v11, 0.0 }
0x102e   :  { %2266 = vadd.xlane.f32.xlu0 %v2265_v15 }
0x10ba   :  { %v2270_v16 = vpop.xlane.xlu1 %2269 }
0x10bb   :  { %v2272_v12 = vmul.f32 0.03125, %v2270_v16  ;;  %v2267_v17 = vpop.xlane.xlu0 %2266 }
0x10bc   :  { %v2271_v18 = vmul.f32 0.03125, %v2267_v17 }
0x10bd   :  { %v2274_v19 = vsub.f32 %v2262_v10, %v2272_v12 }
0x10be   :  { %v2273_v20 = vsub.f32 %v2261_v11, %v2271_v18 }
0x10bf   :  { %v2276_v21 = vmul.f32 %v2274_v19, %v2274_v19 }
0x10c0   :  { %v2275_v22 = vmul.f32 %v2273_v20, %v2273_v20 }
0x10c1   :  { %v2280_v23 = vsel %vm218_vm0, %v2276_v21, 0.0 }
0x10c2   :  { %2281 = vadd.xlane.f32.xlu1 %v2280_v23  ;;  %v2277_v61 = vsel %vm218_vm0, %v2275_v22, 0.0 }
0x10c3   :  { %2278 = vadd.xlane.f32.xlu0 %v2277_v61 }
0x114f   :  { %v2282_v60 = vpop.xlane.xlu1 %2281 }
0x1150   :  { %v2284_v13 = vmul.f32 0.03125, %v2282_v60  ;;  %v2279_v24 = vpop.xlane.xlu0 %2278 }
0x1151   :  { %v2283_v25 = vmul.f32 0.03125, %v2279_v24 }
0x1152   :  { %v2286_v26 = vadd.f32 1e-05, %v2284_v13 }
0x1153   :  { %v2285_v27 = vadd.f32 1e-05, %v2283_v25 }
0x1154   :  { %2696 = vrsqrt.f32 %v2286_v26 }
0x1155   :  { %2698 = vrsqrt.f32 %v2285_v27 }
0x115e   :  { %v2697_v28 = vpop.eup %2696 }
0x115f   :  { %v2699_v30 = vpop.eup %2698  ;;  %v2290_v31 = vmul.f32 %v2697_v28, %v2274_v19 }
0x1160   :  { %v2289_v32 = vmul.f32 %v2699_v30, %v2273_v20 }
0x1161   :  { %v2298_v34 = vmul.f32 %v2376_v29, %v2290_v31 }
0x1162   :  { %v2297_v35 = vmul.f32 %v2376_v29, %v2289_v32 }
0x1163   :  { %v2306_v36 = vadd.f32 %v2377_v33, %v2298_v34 }
0x1164   :  { %v2305_v37 = vadd.f32 %v2377_v33, %v2297_v35 }
0x1165   :  { %2308 = vst.msk [vmem:[#allocation23 + $0x8] sm:$0xff] %vm218_vm0, %v2306_v36 }
0x1166   :  { %2307 = vst.msk [vmem:[#allocation23] sm:$0xff] %vm218_vm0, %v2305_v37 }
0x1167   :  { %2997 = shalt.err (!%p2994_p10)
}
0x1168   :  { %s2998_s24 = scalar_lea.hbm %s3500_s13, 256 }
0x1169   :  { %p2999_p11 = scmp.ne.s32.totalorder %s3500_s13, %s2998_s24  ;;  %p3002_p12 = scmp.lt.u32.totalorder %s2998_s24, %s3500_s13 }
0x116b   :  { %p3004_p13 = pnand %p3002_p12, %p2999_p11 }
0x116d   :  { %3007 = shalt.err (!%p3004_p13)
}
0x116e   :  { %2320 = dma.vmem_to_hbm [thread:$0]  %s2315_s4, 256, %s3500_s13, [#allocation4], %s3026_s20, %s3026_s20, %s3027_s21  }
0x116f   :  { %3022 = dma.done.wait [#allocation4], 256  }
0x1170   :  { %3023 = vsyncadd [#allocation4], 4294967040 }
0x1171   :  { %2324 = vsyncpa [#allocation3], 1 }
0x1172   :  { %2325 = vsyncpa [#allocation6], 1 }
0x1173   :  { %2326 = vsyncpa [#allocation9], 1 }
0x1174   :  { %2327 = vsyncpa [#allocation12], 1 }
0x1175   :  { %2328 = vsyncpa [#allocation15], 1 }
0x1176   :  { %2329 = vsyncpa [#allocation18], 1 }
0x1177   :  { %2330 = vsyncpa [#allocation21], 1 }
0x1178   :  { %2331 = vsyncpa [#allocation4], 1 }

</bundles_post_ra>
